<compile_context>
chip_gen: v7x
topology: tpu7x:2x2x1
jax: 0.10.0
libtpu: 0.0.40
codegen_flags: <defaults>
</compile_context>

<pallas_src>
import jax
import jax.numpy as jnp
from jax.experimental import pallas as pl
from jax.experimental.pallas import tpu as pltpu

# ---- small synthetic CLIP-text config (RN50 real: L=77->80, D=512, H=8, 12 layers)
B = 2          # batch
L = 8          # context length (multiple of 8; real 77 would be padded to 80)
D = 32         # transformer width
H = 4          # attention heads
HD = D // H    # head dim
FF = 4 * D     # MLP hidden
LAYERS = 2
VOCAB = 64
EPS = 1e-5
BL = B * L     # folded batch*seq rows processed per layer step


def _layer_norm(x, w, b):
    mu = jnp.mean(x, axis=-1, keepdims=True)
    var = jnp.mean((x - mu) ** 2, axis=-1, keepdims=True)
    return (x - mu) * jax.lax.rsqrt(var + EPS) * w + b


def _quick_gelu(x):
    # CLIP uses QuickGELU: x * sigmoid(1.702 x)
    return x * jax.nn.sigmoid(1.702 * x)


def text_transformer_kernel(x_ref,
                            ln1w_ref, ln1b_ref,
                            qkvw_ref, qkvb_ref,
                            projw_ref, projb_ref,
                            ln2w_ref, ln2b_ref,
                            fc1w_ref, fc1b_ref,
                            fc2w_ref, fc2b_ref,
                            lnfw_ref, lnfb_ref,
                            o_ref,
                            act_ref, qkv_ref, attn_ref, mask_ref):
    """Fused CLIP text transformer; grid = (LAYERS,), batch folded into the block.

    x_ref:    (B*L, D) input embeddings (read once, at layer 0).
    *w/*b:    (1, ...) per-layer weight slices, pre-transposed (in, out), bf16 mats.
    lnf*:     (1, D)   final LayerNorm params (grid invariant).
    act_ref:  (B*L, D)   f32 VMEM scratch: activation carried across layers.
    qkv_ref:  (B, L, 3D) f32 VMEM scratch: staged qkv (per-head ref slices).
    attn_ref: (B, L, D)  f32 VMEM scratch: concatenated head outputs.
    mask_ref: (L, L)     f32 VMEM scratch: additive causal mask (built at layer 0).
    """
    layer = pl.program_id(0)
    last = pl.num_programs(0) - 1

    @pl.when(layer == 0)
    def _():
        act_ref[...] = x_ref[...]
        row = jax.lax.broadcasted_iota(jnp.int32, (L, L), 0)
        col = jax.lax.broadcasted_iota(jnp.int32, (L, L), 1)
        mask_ref[...] = jnp.where(col <= row, 0.0, -1e30).astype(jnp.float32)

    x = act_ref[...]                                               # (BL, D) f32

    # ---------------- multi-head causal self-attention ----------------
    xn = _layer_norm(x, ln1w_ref[0], ln1b_ref[0])                  # (BL, D) f32
    qkv = jnp.dot(xn.astype(jnp.bfloat16), qkvw_ref[0],
                  preferred_element_type=jnp.float32) + qkvb_ref[0]  # (BL, 3D)
    qkv_ref[...] = qkv.reshape(B, L, 3 * D)                        # stage in VMEM

    # additive causal mask, broadcast hoisted out of the head loop
    neg_mask = jnp.broadcast_to(mask_ref[...], (B, L, L))          # (B, L, L)
    scale = jnp.float32(1.0 / (HD ** 0.5))

    for h in range(H):  # static head loop; each body is batched over B via einsum
        q_h = qkv_ref[:, :, 0 * D + h * HD: 0 * D + (h + 1) * HD].astype(jnp.bfloat16)
        k_h = qkv_ref[:, :, 1 * D + h * HD: 1 * D + (h + 1) * HD].astype(jnp.bfloat16)
        v_h = qkv_ref[:, :, 2 * D + h * HD: 2 * D + (h + 1) * HD].astype(jnp.bfloat16)
        s = jnp.einsum('bld,bmd->blm', q_h, k_h,
                       preferred_element_type=jnp.float32) * scale  # (B, L, L)
        s = s + neg_mask
        s = s - jnp.max(s, axis=-1, keepdims=True)
        p = jnp.exp(s)
        p = p * pl.reciprocal(jnp.sum(p, axis=-1, keepdims=True), approx=True)
        attn_ref[:, :, h * HD:(h + 1) * HD] = jnp.einsum(
            'blm,bmd->bld', p.astype(jnp.bfloat16), v_h,
            preferred_element_type=jnp.float32)                     # (B, L, HD)

    attn = jnp.dot(attn_ref[...].reshape(BL, D).astype(jnp.bfloat16), projw_ref[0],
                   preferred_element_type=jnp.float32) + projb_ref[0]   # (BL, D)
    x = x + attn

    # ---------------- MLP (fc -> QuickGELU -> proj) ----------------
    xn = _layer_norm(x, ln2w_ref[0], ln2b_ref[0])
    hdn = jnp.dot(xn.astype(jnp.bfloat16), fc1w_ref[0],
                  preferred_element_type=jnp.float32) + fc1b_ref[0]     # (BL, FF)
    hdn = _quick_gelu(hdn)
    hdn = jnp.dot(hdn.astype(jnp.bfloat16), fc2w_ref[0],
                  preferred_element_type=jnp.float32) + fc2b_ref[0]     # (BL, D)
    x = x + hdn

    # carry activation to the next layer; skip the dead store on the last layer
    @pl.when(layer < last)
    def _():
        act_ref[...] = x

    # fold the final LayerNorm into the last layer step and emit the output
    @pl.when(layer == last)
    def _():
        o_ref[...] = _layer_norm(x, lnfw_ref[...], lnfb_ref[...])


def pack_params(params):
    """Stack per-layer weights along a leading LAYERS axis; pre-transpose the
    (out, in) PyTorch matrices to (in, out) and cast matmul operands to bf16."""
    layers = params["layers"]

    def stack(name):
        return jnp.stack([lp[name] for lp in layers])

    def stack_t_bf16(name):
        return jnp.stack([lp[name].T for lp in layers]).astype(jnp.bfloat16)

    return {
        "ln1_w": stack("ln1_w"), "ln1_b": stack("ln1_b"),          # (LAYERS, 1, D)
        "qkv_w": stack_t_bf16("qkv_w"),                            # (LAYERS, D, 3D)
        "qkv_b": stack("qkv_b"),                                   # (LAYERS, 1, 3D)
        "proj_w": stack_t_bf16("proj_w"),                          # (LAYERS, D, D)
        "proj_b": stack("proj_b"),                                 # (LAYERS, 1, D)
        "ln2_w": stack("ln2_w"), "ln2_b": stack("ln2_b"),          # (LAYERS, 1, D)
        "fc1_w": stack_t_bf16("fc1_w"),                            # (LAYERS, D, FF)
        "fc1_b": stack("fc1_b"),                                   # (LAYERS, 1, FF)
        "fc2_w": stack_t_bf16("fc2_w"),                            # (LAYERS, FF, D)
        "fc2_b": stack("fc2_b"),                                   # (LAYERS, 1, D)
    }


_WEIGHT_ORDER = ["ln1_w", "ln1_b", "qkv_w", "qkv_b", "proj_w", "proj_b",
                 "ln2_w", "ln2_b", "fc1_w", "fc1_b", "fc2_w", "fc2_b"]


def run_text_transformer(x_flat, packed, lnf_w, lnf_b):
    """x_flat: (B*L, D) f32 embeddings -> (B*L, D) f32 text_emb (post ln_final)."""
    stacked = [packed[k] for k in _WEIGHT_ORDER]

    # activations: single grid-invariant block, DMA'd once (index never changes)
    in_specs = [pl.BlockSpec((BL, D), lambda l: (0, 0))]
    # per-layer stacked weights: layer axis selects the block; double-buffered by
    # default so layer l+1 weights prefetch behind layer l compute.  (At real
    # scale on v5e/v6e, sweep pipeline_mode=pl.Buffered(3) on qkv_w/fc1_w/fc2_w.)
    in_specs += [pl.BlockSpec((1,) + w.shape[1:], lambda l: (l, 0, 0))
                 for w in stacked]
    # grid-invariant final LayerNorm params
    in_specs += [pl.BlockSpec(lnf_w.shape, lambda l: (0, 0)),
                 pl.BlockSpec(lnf_b.shape, lambda l: (0, 0))]

    return pl.pallas_call(
        text_transformer_kernel,
        out_shape=jax.ShapeDtypeStruct((BL, D), jnp.float32),
        grid_spec=pltpu.PrefetchScalarGridSpec(
            num_scalar_prefetch=0,
            grid=(LAYERS,),                       # layer axis only: weights stream once
            in_specs=in_specs,
            out_specs=pl.BlockSpec((BL, D), lambda l: (0, 0)),
            scratch_shapes=[pltpu.VMEM((BL, D), jnp.float32),       # activation carry
                            pltpu.VMEM((B, L, 3 * D), jnp.float32), # staged qkv
                            pltpu.VMEM((B, L, D), jnp.float32),     # head-output slab
                            pltpu.VMEM((L, L), jnp.float32)],       # causal mask
        ),
        compiler_params=pltpu.CompilerParams(
            dimension_semantics=("arbitrary",),   # layer loop is sequential (carry)
            vmem_limit_bytes=48 * 1024 * 1024),   # fits v7x 64 MiB; headroom on v5e/v6e
    )(x_flat, *stacked, lnf_w, lnf_b)


def init_params(key):
    """Deterministic synthetic CLIP-text weights (PyTorch (out, in) layout)."""
    ks = jax.random.split(key, 4 + LAYERS)
    scale = 0.02
    params = {
        "token_emb": scale * jax.random.normal(ks[0], (VOCAB, D), jnp.float32),
        "pos_emb": scale * jax.random.normal(ks[1], (L, D), jnp.float32),
        "lnf_w": jnp.ones((1, D), jnp.float32),
        "lnf_b": jnp.zeros((1, D), jnp.float32),
        "layers": [],
    }
    for i in range(LAYERS):
        lk = jax.random.split(ks[4 + i], 6)
        params["layers"].append({
            "ln1_w": jnp.ones((1, D), jnp.float32),
            "ln1_b": jnp.zeros((1, D), jnp.float32),
            "qkv_w": scale * jax.random.normal(lk[0], (3 * D, D), jnp.float32),
            "qkv_b": jnp.zeros((1, 3 * D), jnp.float32),
            "proj_w": scale * jax.random.normal(lk[1], (D, D), jnp.float32),
            "proj_b": jnp.zeros((1, D), jnp.float32),
            "ln2_w": jnp.ones((1, D), jnp.float32),
            "ln2_b": jnp.zeros((1, D), jnp.float32),
            "fc1_w": scale * jax.random.normal(lk[2], (FF, D), jnp.float32),
            "fc1_b": jnp.zeros((1, FF), jnp.float32),
            "fc2_w": scale * jax.random.normal(lk[3], (D, FF), jnp.float32),
            "fc2_b": jnp.zeros((1, D), jnp.float32),
        })
    return params


def text_encoder_forward(tokens, params):
    """tokens: (B, L) int32 token ids. Returns text_emb: (B, L, D) f32."""
    # glue: embedding gather + positional add; fold batch on the host (free reshape)
    x = jnp.take(params["token_emb"], tokens, axis=0) + params["pos_emb"][None]
    x = x.astype(jnp.float32).reshape(BL, D)
    packed = pack_params(params)
    # hot path: all transformer blocks + final LayerNorm in ONE Pallas kernel
    out = run_text_transformer(x, packed, params["lnf_w"], params["lnf_b"])
    return out.reshape(B, L, D)


def reference_forward(tokens, params):
    """Pure-JAX f32 reference of the CLIP text transformer (for correctness)."""
    x = jnp.take(params["token_emb"], tokens, axis=0) + params["pos_emb"][None]
    mask = jnp.tril(jnp.ones((L, L), bool))
    for p in params["layers"]:
        xn = _layer_norm(x, p["ln1_w"], p["ln1_b"])
        qkv = xn @ p["qkv_w"].T + p["qkv_b"]
        q, k, v = jnp.split(qkv, 3, axis=-1)
        q = q.reshape(B, L, H, HD).transpose(0, 2, 1, 3)
        k = k.reshape(B, L, H, HD).transpose(0, 2, 1, 3)
        v = v.reshape(B, L, H, HD).transpose(0, 2, 1, 3)
        s = (q @ jnp.swapaxes(k, -1, -2)) / (HD ** 0.5)
        s = jnp.where(mask, s, jnp.float32(-1e30))
        a = jax.nn.softmax(s, axis=-1) @ v
        a = a.transpose(0, 2, 1, 3).reshape(B, L, D)
        x = x + (a @ p["proj_w"].T + p["proj_b"])
        xn = _layer_norm(x, p["ln2_w"], p["ln2_b"])
        h1 = xn @ p["fc1_w"].T + p["fc1_b"]
        h1 = _quick_gelu(h1)
        x = x + (h1 @ p["fc2_w"].T + p["fc2_b"])
    return _layer_norm(x, params["lnf_w"], params["lnf_b"])


if __name__ == "__main__":
    key = jax.random.PRNGKey(0)
    pkey, tkey = jax.random.split(key)
    params = init_params(pkey)
    # pre-tokenized ids: random body, trailing zeros (padding)
    tokens = jax.random.randint(tkey, (B, L), 1, VOCAB, dtype=jnp.int32)
    tokens = tokens.at[:, -2:].set(0)

    text_emb = text_encoder_forward(tokens, params)
    jax.block_until_ready(text_emb)

    assert text_emb.shape == (B, L, D)
    assert text_emb.dtype == jnp.float32
    assert bool(jnp.all(jnp.isfinite(text_emb)))

    # numerical check against the pure-JAX f32 reference; output is post-LayerNorm
    # (unit scale) so abs err ~ rel err.  bf16 matmuls + approx reciprocal bound it.
    ref = reference_forward(tokens, params)
    max_err = float(jnp.max(jnp.abs(text_emb - ref)))
    assert max_err < 5e-2, f"max abs err {max_err}"

    print("KERNEL_OK")
</pallas_src>

<mosaic_0001>
module attributes {stable_mosaic.version = 11 : i64} {
  func.func @text_transformer_kernel(%arg0: i32, %arg1: memref<16x32xf32, #tpu.memory_space<vmem>>, %arg2: memref<1x1x32xf32, #tpu.memory_space<vmem>>, %arg3: memref<1x1x32xf32, #tpu.memory_space<vmem>>, %arg4: memref<1x32x96xbf16, #tpu.memory_space<vmem>>, %arg5: memref<1x1x96xf32, #tpu.memory_space<vmem>>, %arg6: memref<1x32x32xbf16, #tpu.memory_space<vmem>>, %arg7: memref<1x1x32xf32, #tpu.memory_space<vmem>>, %arg8: memref<1x1x32xf32, #tpu.memory_space<vmem>>, %arg9: memref<1x1x32xf32, #tpu.memory_space<vmem>>, %arg10: memref<1x32x128xbf16, #tpu.memory_space<vmem>>, %arg11: memref<1x1x128xf32, #tpu.memory_space<vmem>>, %arg12: memref<1x128x32xbf16, #tpu.memory_space<vmem>>, %arg13: memref<1x1x32xf32, #tpu.memory_space<vmem>>, %arg14: memref<1x32xf32, #tpu.memory_space<vmem>>, %arg15: memref<1x32xf32, #tpu.memory_space<vmem>>, %arg16: memref<16x32xf32, #tpu.memory_space<vmem>>, %arg17: memref<16x32xf32, #tpu.memory_space<vmem>>, %arg18: memref<2x8x96xf32, #tpu.memory_space<vmem>>, %arg19: memref<2x8x32xf32, #tpu.memory_space<vmem>>, %arg20: memref<8x8xf32, #tpu.memory_space<vmem>>) attributes {dimension_semantics = [#tpu.dimension_semantics<arbitrary>], iteration_bounds = array<i64: 2>, scalar_prefetch = 0 : i64, scratch_operands = 4 : i64, tpu.core_type = #tpu.core_type<tc>, window_params = [{pipeline_mode = #tpu.pipeline_mode<synchronous>, transform_indices = @transform_0, window_bounds = array<i64: 16, 32>}, {transform_indices = @transform_1, window_bounds = array<i64: 1, 1, 32>}, {transform_indices = @transform_2, window_bounds = array<i64: 1, 1, 32>}, {transform_indices = @transform_3, window_bounds = array<i64: 1, 32, 96>}, {transform_indices = @transform_4, window_bounds = array<i64: 1, 1, 96>}, {transform_indices = @transform_5, window_bounds = array<i64: 1, 32, 32>}, {transform_indices = @transform_6, window_bounds = array<i64: 1, 1, 32>}, {transform_indices = @transform_7, window_bounds = array<i64: 1, 1, 32>}, {transform_indices = @transform_8, window_bounds = array<i64: 1, 1, 32>}, {transform_indices = @transform_9, window_bounds = array<i64: 1, 32, 128>}, {transform_indices = @transform_10, window_bounds = array<i64: 1, 1, 128>}, {transform_indices = @transform_11, window_bounds = array<i64: 1, 128, 32>}, {transform_indices = @transform_12, window_bounds = array<i64: 1, 1, 32>}, {pipeline_mode = #tpu.pipeline_mode<synchronous>, transform_indices = @transform_13, window_bounds = array<i64: 1, 32>}, {pipeline_mode = #tpu.pipeline_mode<synchronous>, transform_indices = @transform_14, window_bounds = array<i64: 1, 32>}, {pipeline_mode = #tpu.pipeline_mode<synchronous>, transform_indices = @transform_15, window_bounds = array<i64: 16, 32>}]} {
    %c0_i32 = arith.constant 0 : i32
    %0 = arith.cmpi eq, %arg0, %c0_i32 : i32
    %1 = arith.extui %0 : i1 to i32
    %c0_i32_0 = arith.constant 0 : i32
    %2 = arith.cmpi ne, %1, %c0_i32_0 : i32
    scf.if %2 {
      %c0_121 = arith.constant 0 : index
      %c0_122 = arith.constant 0 : index
      %203 = vector.load %arg1[%c0_121, %c0_122] : memref<16x32xf32, #tpu.memory_space<vmem>>, vector<16x32xf32>
      %c0_123 = arith.constant 0 : index
      %c0_124 = arith.constant 0 : index
      %204 = vector.load %arg17[%c0_123, %c0_124] : memref<16x32xf32, #tpu.memory_space<vmem>>, vector<16x32xf32>
      tpu.vector_store %arg17[%c0_123, %c0_124], %203 {strides = array<i32>} : memref<16x32xf32, #tpu.memory_space<vmem>>, vector<16x32xf32>,
      %205 = tpu.iota {dimensions = array<i32: 0>} : vector<8x8xi32>
      %206 = tpu.iota {dimensions = array<i32: 1>} : vector<8x8xi32>
      %207 = arith.cmpi sle, %206, %205 : vector<8x8xi32>
      %cst_125 = arith.constant 0.000000e+00 : f32
      %cst_126 = arith.constant -1.000000e+30 : f32
      %208 = vector.broadcast %cst_125 : f32 to vector<8x8xf32>
      %209 = vector.broadcast %cst_126 : f32 to vector<8x8xf32>
      %210 = arith.select %207, %208, %209 : vector<8x8xi1>, vector<8x8xf32>
      %c0_127 = arith.constant 0 : index
      %c0_128 = arith.constant 0 : index
      %211 = vector.load %arg20[%c0_127, %c0_128] : memref<8x8xf32, #tpu.memory_space<vmem>>, vector<8x8xf32>
      tpu.vector_store %arg20[%c0_127, %c0_128], %210 {strides = array<i32>} : memref<8x8xf32, #tpu.memory_space<vmem>>, vector<8x8xf32>,
    } else {
    }
    %c0 = arith.constant 0 : index
    %c0_1 = arith.constant 0 : index
    %3 = vector.load %arg17[%c0, %c0_1] : memref<16x32xf32, #tpu.memory_space<vmem>>, vector<16x32xf32>
    %c0_2 = arith.constant 0 : index
    %c0_3 = arith.constant 0 : index
    %c0_4 = arith.constant 0 : index
    %4 = vector.load %arg2[%c0_2, %c0_3, %c0_4] : memref<1x1x32xf32, #tpu.memory_space<vmem>>, vector<1x1x32xf32>
    %5 = vector.shape_cast %4 : vector<1x1x32xf32> to vector<1x32xf32>
    %c0_5 = arith.constant 0 : index
    %c0_6 = arith.constant 0 : index
    %c0_7 = arith.constant 0 : index
    %6 = vector.load %arg3[%c0_5, %c0_6, %c0_7] : memref<1x1x32xf32, #tpu.memory_space<vmem>>, vector<1x1x32xf32>
    %7 = vector.shape_cast %6 : vector<1x1x32xf32> to vector<1x32xf32>
    %cst = arith.constant dense<0.000000e+00> : vector<16xf32>
    %8 = vector.multi_reduction <add>, %3, %cst [1] : vector<16x32xf32> to vector<16xf32>
    %9 = vector.shape_cast %8 : vector<16xf32> to vector<16x1xf32>
    %cst_8 = arith.constant 3.200000e+01 : f32
    %10 = vector.broadcast %cst_8 : f32 to vector<16x1xf32>
    %11 = arith.divf %9, %10 : vector<16x1xf32>
    %12 = vector.broadcast %11 : vector<16x1xf32> to vector<16x32xf32>
    %13 = arith.subf %3, %12 : vector<16x32xf32>
    %14 = arith.mulf %13, %13 : vector<16x32xf32>
    %cst_9 = arith.constant dense<0.000000e+00> : vector<16xf32>
    %15 = vector.multi_reduction <add>, %14, %cst_9 [1] : vector<16x32xf32> to vector<16xf32>
    %16 = vector.shape_cast %15 : vector<16xf32> to vector<16x1xf32>
    %cst_10 = arith.constant 3.200000e+01 : f32
    %17 = vector.broadcast %cst_10 : f32 to vector<16x1xf32>
    %18 = arith.divf %16, %17 : vector<16x1xf32>
    %19 = vector.broadcast %11 : vector<16x1xf32> to vector<16x32xf32>
    %20 = arith.subf %3, %19 : vector<16x32xf32>
    %cst_11 = arith.constant 9.99999974E-6 : f32
    %21 = vector.broadcast %cst_11 : f32 to vector<16x1xf32>
    %22 = arith.addf %18, %21 : vector<16x1xf32>
    %23 = math.rsqrt %22 : vector<16x1xf32>
    %24 = vector.broadcast %23 : vector<16x1xf32> to vector<16x32xf32>
    %25 = arith.mulf %20, %24 : vector<16x32xf32>
    %26 = vector.broadcast %5 : vector<1x32xf32> to vector<16x32xf32>
    %27 = arith.mulf %25, %26 : vector<16x32xf32>
    %28 = vector.broadcast %7 : vector<1x32xf32> to vector<16x32xf32>
    %29 = arith.addf %27, %28 : vector<16x32xf32>
    %30 = arith.truncf %29 : vector<16x32xf32> to vector<16x32xbf16>
    %c0_12 = arith.constant 0 : index
    %c0_13 = arith.constant 0 : index
    %c0_14 = arith.constant 0 : index
    %31 = vector.load %arg4[%c0_12, %c0_13, %c0_14] : memref<1x32x96xbf16, #tpu.memory_space<vmem>>, vector<1x32x96xbf16>
    %32 = vector.shape_cast %31 : vector<1x32x96xbf16> to vector<32x96xbf16>
    %cst_15 = arith.constant dense<0.000000e+00> : vector<16x96xf32>
    %33 = tpu.matmul %30, %32, %cst_15 {dimension_numbers = #tpu.dot_dimension_numbers<[1], [0], [0], [1], [0, 0, 1, 1], [], []>} : vector<16x32xbf16>, vector<32x96xbf16>, vector<16x96xf32> -> vector<16x96xf32>
    %c0_16 = arith.constant 0 : index
    %c0_17 = arith.constant 0 : index
    %c0_18 = arith.constant 0 : index
    %34 = vector.load %arg5[%c0_16, %c0_17, %c0_18] : memref<1x1x96xf32, #tpu.memory_space<vmem>>, vector<1x1x96xf32>
    %35 = vector.shape_cast %34 : vector<1x1x96xf32> to vector<1x96xf32>
    %36 = vector.broadcast %35 : vector<1x96xf32> to vector<16x96xf32>
    %37 = arith.addf %33, %36 : vector<16x96xf32>
    %38 = vector.shape_cast %37 : vector<16x96xf32> to vector<2x8x96xf32>
    %c0_19 = arith.constant 0 : index
    %c0_20 = arith.constant 0 : index
    %c0_21 = arith.constant 0 : index
    %39 = vector.load %arg18[%c0_19, %c0_20, %c0_21] : memref<2x8x96xf32, #tpu.memory_space<vmem>>, vector<2x8x96xf32>
    tpu.vector_store %arg18[%c0_19, %c0_20, %c0_21], %38 {strides = array<i32>} : memref<2x8x96xf32, #tpu.memory_space<vmem>>, vector<2x8x96xf32>,
    %c0_22 = arith.constant 0 : index
    %c0_23 = arith.constant 0 : index
    %40 = vector.load %arg20[%c0_22, %c0_23] : memref<8x8xf32, #tpu.memory_space<vmem>>, vector<8x8xf32>
    %41 = vector.shape_cast %40 : vector<8x8xf32> to vector<1x8x8xf32>
    %42 = vector.broadcast %41 : vector<1x8x8xf32> to vector<2x8x8xf32>
    %c0_24 = arith.constant 0 : index
    %c0_25 = arith.constant 0 : index
    %c0_26 = arith.constant 0 : index
    %43 = vector.load %arg18[%c0_24, %c0_25, %c0_26] : memref<2x8x96xf32, #tpu.memory_space<vmem>>, vector<2x8x8xf32>
    %44 = arith.truncf %43 : vector<2x8x8xf32> to vector<2x8x8xbf16>
    %c0_27 = arith.constant 0 : index
    %c0_28 = arith.constant 0 : index
    %c32 = arith.constant 32 : index
    %45 = vector.load %arg18[%c0_27, %c0_28, %c32] : memref<2x8x96xf32, #tpu.memory_space<vmem>>, vector<2x8x8xf32>
    %46 = arith.truncf %45 : vector<2x8x8xf32> to vector<2x8x8xbf16>
    %c0_29 = arith.constant 0 : index
    %c0_30 = arith.constant 0 : index
    %c64 = arith.constant 64 : index
    %47 = vector.load %arg18[%c0_29, %c0_30, %c64] : memref<2x8x96xf32, #tpu.memory_space<vmem>>, vector<2x8x8xf32>
    %48 = arith.truncf %47 : vector<2x8x8xf32> to vector<2x8x8xbf16>
    "tpu.trace_start"() <{level = 10 : i32, message = "bld,bmd->blm"}> : () -> ()
    %cst_31 = arith.constant dense<0.000000e+00> : vector<2x8x8xf32>
    %49 = tpu.matmul %44, %46, %cst_31 {dimension_numbers = #tpu.dot_dimension_numbers<[2], [2], [1], [1], [0, 0, 0, 1, 1, 1], [0], [0]>} : vector<2x8x8xbf16>, vector<2x8x8xbf16>, vector<2x8x8xf32> -> vector<2x8x8xf32>
    "tpu.trace_stop"() : () -> ()
    %cst_32 = arith.constant 0.353553385 : f32
    %50 = vector.broadcast %cst_32 : f32 to vector<2x8x8xf32>
    %51 = arith.mulf %49, %50 : vector<2x8x8xf32>
    %52 = arith.addf %51, %42 : vector<2x8x8xf32>
    %cst_33 = arith.constant dense<0xFF800000> : vector<2x8xf32>
    %53 = vector.multi_reduction <maximumf>, %52, %cst_33 [2] : vector<2x8x8xf32> to vector<2x8xf32>
    %54 = vector.shape_cast %53 : vector<2x8xf32> to vector<2x8x1xf32>
    %55 = vector.broadcast %54 : vector<2x8x1xf32> to vector<2x8x8xf32>
    %56 = arith.subf %52, %55 : vector<2x8x8xf32>
    %57 = math.exp %56 : vector<2x8x8xf32>
    %cst_34 = arith.constant dense<0.000000e+00> : vector<2x8xf32>
    %58 = vector.multi_reduction <add>, %57, %cst_34 [2] : vector<2x8x8xf32> to vector<2x8xf32>
    %59 = vector.shape_cast %58 : vector<2x8xf32> to vector<2x8x1xf32>
    %60 = tpu.reciprocal %59 {approx = true} : vector<2x8x1xf32> -> vector<2x8x1xf32>
    %61 = vector.broadcast %60 : vector<2x8x1xf32> to vector<2x8x8xf32>
    %62 = arith.mulf %57, %61 : vector<2x8x8xf32>
    %63 = arith.truncf %62 : vector<2x8x8xf32> to vector<2x8x8xbf16>
    "tpu.trace_start"() <{level = 10 : i32, message = "blm,bmd->bld"}> : () -> ()
    %cst_35 = arith.constant dense<0.000000e+00> : vector<2x8x8xf32>
    %64 = tpu.matmul %63, %48, %cst_35 {dimension_numbers = #tpu.dot_dimension_numbers<[2], [1], [1], [2], [0, 0, 0, 1, 1, 2], [0], [0]>} : vector<2x8x8xbf16>, vector<2x8x8xbf16>, vector<2x8x8xf32> -> vector<2x8x8xf32>
    "tpu.trace_stop"() : () -> ()
    %c0_36 = arith.constant 0 : index
    %c0_37 = arith.constant 0 : index
    %c0_38 = arith.constant 0 : index
    %65 = vector.load %arg19[%c0_36, %c0_37, %c0_38] : memref<2x8x32xf32, #tpu.memory_space<vmem>>, vector<2x8x8xf32>
    tpu.vector_store %arg19[%c0_36, %c0_37, %c0_38], %64 {strides = array<i32>} : memref<2x8x32xf32, #tpu.memory_space<vmem>>, vector<2x8x8xf32>,
    %c0_39 = arith.constant 0 : index
    %c0_40 = arith.constant 0 : index
    %c8 = arith.constant 8 : index
    %66 = vector.load %arg18[%c0_39, %c0_40, %c8] : memref<2x8x96xf32, #tpu.memory_space<vmem>>, vector<2x8x8xf32>
    %67 = arith.truncf %66 : vector<2x8x8xf32> to vector<2x8x8xbf16>
    %c0_41 = arith.constant 0 : index
    %c0_42 = arith.constant 0 : index
    %c40 = arith.constant 40 : index
    %68 = vector.load %arg18[%c0_41, %c0_42, %c40] : memref<2x8x96xf32, #tpu.memory_space<vmem>>, vector<2x8x8xf32>
    %69 = arith.truncf %68 : vector<2x8x8xf32> to vector<2x8x8xbf16>
    %c0_43 = arith.constant 0 : index
    %c0_44 = arith.constant 0 : index
    %c72 = arith.constant 72 : index
    %70 = vector.load %arg18[%c0_43, %c0_44, %c72] : memref<2x8x96xf32, #tpu.memory_space<vmem>>, vector<2x8x8xf32>
    %71 = arith.truncf %70 : vector<2x8x8xf32> to vector<2x8x8xbf16>
    "tpu.trace_start"() <{level = 10 : i32, message = "bld,bmd->blm"}> : () -> ()
    %cst_45 = arith.constant dense<0.000000e+00> : vector<2x8x8xf32>
    %72 = tpu.matmul %67, %69, %cst_45 {dimension_numbers = #tpu.dot_dimension_numbers<[2], [2], [1], [1], [0, 0, 0, 1, 1, 1], [0], [0]>} : vector<2x8x8xbf16>, vector<2x8x8xbf16>, vector<2x8x8xf32> -> vector<2x8x8xf32>
    "tpu.trace_stop"() : () -> ()
    %cst_46 = arith.constant 0.353553385 : f32
    %73 = vector.broadcast %cst_46 : f32 to vector<2x8x8xf32>
    %74 = arith.mulf %72, %73 : vector<2x8x8xf32>
    %75 = arith.addf %74, %42 : vector<2x8x8xf32>
    %cst_47 = arith.constant dense<0xFF800000> : vector<2x8xf32>
    %76 = vector.multi_reduction <maximumf>, %75, %cst_47 [2] : vector<2x8x8xf32> to vector<2x8xf32>
    %77 = vector.shape_cast %76 : vector<2x8xf32> to vector<2x8x1xf32>
    %78 = vector.broadcast %77 : vector<2x8x1xf32> to vector<2x8x8xf32>
    %79 = arith.subf %75, %78 : vector<2x8x8xf32>
    %80 = math.exp %79 : vector<2x8x8xf32>
    %cst_48 = arith.constant dense<0.000000e+00> : vector<2x8xf32>
    %81 = vector.multi_reduction <add>, %80, %cst_48 [2] : vector<2x8x8xf32> to vector<2x8xf32>
    %82 = vector.shape_cast %81 : vector<2x8xf32> to vector<2x8x1xf32>
    %83 = tpu.reciprocal %82 {approx = true} : vector<2x8x1xf32> -> vector<2x8x1xf32>
    %84 = vector.broadcast %83 : vector<2x8x1xf32> to vector<2x8x8xf32>
    %85 = arith.mulf %80, %84 : vector<2x8x8xf32>
    %86 = arith.truncf %85 : vector<2x8x8xf32> to vector<2x8x8xbf16>
    "tpu.trace_start"() <{level = 10 : i32, message = "blm,bmd->bld"}> : () -> ()
    %cst_49 = arith.constant dense<0.000000e+00> : vector<2x8x8xf32>
    %87 = tpu.matmul %86, %71, %cst_49 {dimension_numbers = #tpu.dot_dimension_numbers<[2], [1], [1], [2], [0, 0, 0, 1, 1, 2], [0], [0]>} : vector<2x8x8xbf16>, vector<2x8x8xbf16>, vector<2x8x8xf32> -> vector<2x8x8xf32>
    "tpu.trace_stop"() : () -> ()
    %c0_50 = arith.constant 0 : index
    %c0_51 = arith.constant 0 : index
    %c8_52 = arith.constant 8 : index
    %88 = vector.load %arg19[%c0_50, %c0_51, %c8_52] : memref<2x8x32xf32, #tpu.memory_space<vmem>>, vector<2x8x8xf32>
    tpu.vector_store %arg19[%c0_50, %c0_51, %c8_52], %87 {strides = array<i32>} : memref<2x8x32xf32, #tpu.memory_space<vmem>>, vector<2x8x8xf32>,
    %c0_53 = arith.constant 0 : index
    %c0_54 = arith.constant 0 : index
    %c16 = arith.constant 16 : index
    %89 = vector.load %arg18[%c0_53, %c0_54, %c16] : memref<2x8x96xf32, #tpu.memory_space<vmem>>, vector<2x8x8xf32>
    %90 = arith.truncf %89 : vector<2x8x8xf32> to vector<2x8x8xbf16>
    %c0_55 = arith.constant 0 : index
    %c0_56 = arith.constant 0 : index
    %c48 = arith.constant 48 : index
    %91 = vector.load %arg18[%c0_55, %c0_56, %c48] : memref<2x8x96xf32, #tpu.memory_space<vmem>>, vector<2x8x8xf32>
    %92 = arith.truncf %91 : vector<2x8x8xf32> to vector<2x8x8xbf16>
    %c0_57 = arith.constant 0 : index
    %c0_58 = arith.constant 0 : index
    %c80 = arith.constant 80 : index
    %93 = vector.load %arg18[%c0_57, %c0_58, %c80] : memref<2x8x96xf32, #tpu.memory_space<vmem>>, vector<2x8x8xf32>
    %94 = arith.truncf %93 : vector<2x8x8xf32> to vector<2x8x8xbf16>
    "tpu.trace_start"() <{level = 10 : i32, message = "bld,bmd->blm"}> : () -> ()
    %cst_59 = arith.constant dense<0.000000e+00> : vector<2x8x8xf32>
    %95 = tpu.matmul %90, %92, %cst_59 {dimension_numbers = #tpu.dot_dimension_numbers<[2], [2], [1], [1], [0, 0, 0, 1, 1, 1], [0], [0]>} : vector<2x8x8xbf16>, vector<2x8x8xbf16>, vector<2x8x8xf32> -> vector<2x8x8xf32>
    "tpu.trace_stop"() : () -> ()
    %cst_60 = arith.constant 0.353553385 : f32
    %96 = vector.broadcast %cst_60 : f32 to vector<2x8x8xf32>
    %97 = arith.mulf %95, %96 : vector<2x8x8xf32>
    %98 = arith.addf %97, %42 : vector<2x8x8xf32>
    %cst_61 = arith.constant dense<0xFF800000> : vector<2x8xf32>
    %99 = vector.multi_reduction <maximumf>, %98, %cst_61 [2] : vector<2x8x8xf32> to vector<2x8xf32>
    %100 = vector.shape_cast %99 : vector<2x8xf32> to vector<2x8x1xf32>
    %101 = vector.broadcast %100 : vector<2x8x1xf32> to vector<2x8x8xf32>
    %102 = arith.subf %98, %101 : vector<2x8x8xf32>
    %103 = math.exp %102 : vector<2x8x8xf32>
    %cst_62 = arith.constant dense<0.000000e+00> : vector<2x8xf32>
    %104 = vector.multi_reduction <add>, %103, %cst_62 [2] : vector<2x8x8xf32> to vector<2x8xf32>
    %105 = vector.shape_cast %104 : vector<2x8xf32> to vector<2x8x1xf32>
    %106 = tpu.reciprocal %105 {approx = true} : vector<2x8x1xf32> -> vector<2x8x1xf32>
    %107 = vector.broadcast %106 : vector<2x8x1xf32> to vector<2x8x8xf32>
    %108 = arith.mulf %103, %107 : vector<2x8x8xf32>
    %109 = arith.truncf %108 : vector<2x8x8xf32> to vector<2x8x8xbf16>
    "tpu.trace_start"() <{level = 10 : i32, message = "blm,bmd->bld"}> : () -> ()
    %cst_63 = arith.constant dense<0.000000e+00> : vector<2x8x8xf32>
    %110 = tpu.matmul %109, %94, %cst_63 {dimension_numbers = #tpu.dot_dimension_numbers<[2], [1], [1], [2], [0, 0, 0, 1, 1, 2], [0], [0]>} : vector<2x8x8xbf16>, vector<2x8x8xbf16>, vector<2x8x8xf32> -> vector<2x8x8xf32>
    "tpu.trace_stop"() : () -> ()
    %c0_64 = arith.constant 0 : index
    %c0_65 = arith.constant 0 : index
    %c16_66 = arith.constant 16 : index
    %111 = vector.load %arg19[%c0_64, %c0_65, %c16_66] : memref<2x8x32xf32, #tpu.memory_space<vmem>>, vector<2x8x8xf32>
    tpu.vector_store %arg19[%c0_64, %c0_65, %c16_66], %110 {strides = array<i32>} : memref<2x8x32xf32, #tpu.memory_space<vmem>>, vector<2x8x8xf32>,
    %c0_67 = arith.constant 0 : index
    %c0_68 = arith.constant 0 : index
    %c24 = arith.constant 24 : index
    %112 = vector.load %arg18[%c0_67, %c0_68, %c24] : memref<2x8x96xf32, #tpu.memory_space<vmem>>, vector<2x8x8xf32>
    %113 = arith.truncf %112 : vector<2x8x8xf32> to vector<2x8x8xbf16>
    %c0_69 = arith.constant 0 : index
    %c0_70 = arith.constant 0 : index
    %c56 = arith.constant 56 : index
    %114 = vector.load %arg18[%c0_69, %c0_70, %c56] : memref<2x8x96xf32, #tpu.memory_space<vmem>>, vector<2x8x8xf32>
    %115 = arith.truncf %114 : vector<2x8x8xf32> to vector<2x8x8xbf16>
    %c0_71 = arith.constant 0 : index
    %c0_72 = arith.constant 0 : index
    %c88 = arith.constant 88 : index
    %116 = vector.load %arg18[%c0_71, %c0_72, %c88] : memref<2x8x96xf32, #tpu.memory_space<vmem>>, vector<2x8x8xf32>
    %117 = arith.truncf %116 : vector<2x8x8xf32> to vector<2x8x8xbf16>
    "tpu.trace_start"() <{level = 10 : i32, message = "bld,bmd->blm"}> : () -> ()
    %cst_73 = arith.constant dense<0.000000e+00> : vector<2x8x8xf32>
    %118 = tpu.matmul %113, %115, %cst_73 {dimension_numbers = #tpu.dot_dimension_numbers<[2], [2], [1], [1], [0, 0, 0, 1, 1, 1], [0], [0]>} : vector<2x8x8xbf16>, vector<2x8x8xbf16>, vector<2x8x8xf32> -> vector<2x8x8xf32>
    "tpu.trace_stop"() : () -> ()
    %cst_74 = arith.constant 0.353553385 : f32
    %119 = vector.broadcast %cst_74 : f32 to vector<2x8x8xf32>
    %120 = arith.mulf %118, %119 : vector<2x8x8xf32>
    %121 = arith.addf %120, %42 : vector<2x8x8xf32>
    %cst_75 = arith.constant dense<0xFF800000> : vector<2x8xf32>
    %122 = vector.multi_reduction <maximumf>, %121, %cst_75 [2] : vector<2x8x8xf32> to vector<2x8xf32>
    %123 = vector.shape_cast %122 : vector<2x8xf32> to vector<2x8x1xf32>
    %124 = vector.broadcast %123 : vector<2x8x1xf32> to vector<2x8x8xf32>
    %125 = arith.subf %121, %124 : vector<2x8x8xf32>
    %126 = math.exp %125 : vector<2x8x8xf32>
    %cst_76 = arith.constant dense<0.000000e+00> : vector<2x8xf32>
    %127 = vector.multi_reduction <add>, %126, %cst_76 [2] : vector<2x8x8xf32> to vector<2x8xf32>
    %128 = vector.shape_cast %127 : vector<2x8xf32> to vector<2x8x1xf32>
    %129 = tpu.reciprocal %128 {approx = true} : vector<2x8x1xf32> -> vector<2x8x1xf32>
    %130 = vector.broadcast %129 : vector<2x8x1xf32> to vector<2x8x8xf32>
    %131 = arith.mulf %126, %130 : vector<2x8x8xf32>
    %132 = arith.truncf %131 : vector<2x8x8xf32> to vector<2x8x8xbf16>
    "tpu.trace_start"() <{level = 10 : i32, message = "blm,bmd->bld"}> : () -> ()
    %cst_77 = arith.constant dense<0.000000e+00> : vector<2x8x8xf32>
    %133 = tpu.matmul %132, %117, %cst_77 {dimension_numbers = #tpu.dot_dimension_numbers<[2], [1], [1], [2], [0, 0, 0, 1, 1, 2], [0], [0]>} : vector<2x8x8xbf16>, vector<2x8x8xbf16>, vector<2x8x8xf32> -> vector<2x8x8xf32>
    "tpu.trace_stop"() : () -> ()
    %c0_78 = arith.constant 0 : index
    %c0_79 = arith.constant 0 : index
    %c24_80 = arith.constant 24 : index
    %134 = vector.load %arg19[%c0_78, %c0_79, %c24_80] : memref<2x8x32xf32, #tpu.memory_space<vmem>>, vector<2x8x8xf32>
    tpu.vector_store %arg19[%c0_78, %c0_79, %c24_80], %133 {strides = array<i32>} : memref<2x8x32xf32, #tpu.memory_space<vmem>>, vector<2x8x8xf32>,
    %c0_81 = arith.constant 0 : index
    %c0_82 = arith.constant 0 : index
    %c0_83 = arith.constant 0 : index
    %135 = vector.load %arg19[%c0_81, %c0_82, %c0_83] : memref<2x8x32xf32, #tpu.memory_space<vmem>>, vector<2x8x32xf32>
    %136 = vector.shape_cast %135 : vector<2x8x32xf32> to vector<16x32xf32>
    %137 = arith.truncf %136 : vector<16x32xf32> to vector<16x32xbf16>
    %c0_84 = arith.constant 0 : index
    %c0_85 = arith.constant 0 : index
    %c0_86 = arith.constant 0 : index
    %138 = vector.load %arg6[%c0_84, %c0_85, %c0_86] : memref<1x32x32xbf16, #tpu.memory_space<vmem>>, vector<1x32x32xbf16>
    %139 = vector.shape_cast %138 : vector<1x32x32xbf16> to vector<32x32xbf16>
    %cst_87 = arith.constant dense<0.000000e+00> : vector<16x32xf32>
    %140 = tpu.matmul %137, %139, %cst_87 {dimension_numbers = #tpu.dot_dimension_numbers<[1], [0], [0], [1], [0, 0, 1, 1], [], []>} : vector<16x32xbf16>, vector<32x32xbf16>, vector<16x32xf32> -> vector<16x32xf32>
    %c0_88 = arith.constant 0 : index
    %c0_89 = arith.constant 0 : index
    %c0_90 = arith.constant 0 : index
    %141 = vector.load %arg7[%c0_88, %c0_89, %c0_90] : memref<1x1x32xf32, #tpu.memory_space<vmem>>, vector<1x1x32xf32>
    %142 = vector.shape_cast %141 : vector<1x1x32xf32> to vector<1x32xf32>
    %143 = vector.broadcast %142 : vector<1x32xf32> to vector<16x32xf32>
    %144 = arith.addf %140, %143 : vector<16x32xf32>
    %145 = arith.addf %3, %144 : vector<16x32xf32>
    %c0_91 = arith.constant 0 : index
    %c0_92 = arith.constant 0 : index
    %c0_93 = arith.constant 0 : index
    %146 = vector.load %arg8[%c0_91, %c0_92, %c0_93] : memref<1x1x32xf32, #tpu.memory_space<vmem>>, vector<1x1x32xf32>
    %147 = vector.shape_cast %146 : vector<1x1x32xf32> to vector<1x32xf32>
    %c0_94 = arith.constant 0 : index
    %c0_95 = arith.constant 0 : index
    %c0_96 = arith.constant 0 : index
    %148 = vector.load %arg9[%c0_94, %c0_95, %c0_96] : memref<1x1x32xf32, #tpu.memory_space<vmem>>, vector<1x1x32xf32>
    %149 = vector.shape_cast %148 : vector<1x1x32xf32> to vector<1x32xf32>
    %cst_97 = arith.constant dense<0.000000e+00> : vector<16xf32>
    %150 = vector.multi_reduction <add>, %145, %cst_97 [1] : vector<16x32xf32> to vector<16xf32>
    %151 = vector.shape_cast %150 : vector<16xf32> to vector<16x1xf32>
    %cst_98 = arith.constant 3.200000e+01 : f32
    %152 = vector.broadcast %cst_98 : f32 to vector<16x1xf32>
    %153 = arith.divf %151, %152 : vector<16x1xf32>
    %154 = vector.broadcast %153 : vector<16x1xf32> to vector<16x32xf32>
    %155 = arith.subf %145, %154 : vector<16x32xf32>
    %156 = arith.mulf %155, %155 : vector<16x32xf32>
    %cst_99 = arith.constant dense<0.000000e+00> : vector<16xf32>
    %157 = vector.multi_reduction <add>, %156, %cst_99 [1] : vector<16x32xf32> to vector<16xf32>
    %158 = vector.shape_cast %157 : vector<16xf32> to vector<16x1xf32>
    %cst_100 = arith.constant 3.200000e+01 : f32
    %159 = vector.broadcast %cst_100 : f32 to vector<16x1xf32>
    %160 = arith.divf %158, %159 : vector<16x1xf32>
    %161 = vector.broadcast %153 : vector<16x1xf32> to vector<16x32xf32>
    %162 = arith.subf %145, %161 : vector<16x32xf32>
    %cst_101 = arith.constant 9.99999974E-6 : f32
    %163 = vector.broadcast %cst_101 : f32 to vector<16x1xf32>
    %164 = arith.addf %160, %163 : vector<16x1xf32>
    %165 = math.rsqrt %164 : vector<16x1xf32>
    %166 = vector.broadcast %165 : vector<16x1xf32> to vector<16x32xf32>
    %167 = arith.mulf %162, %166 : vector<16x32xf32>
    %168 = vector.broadcast %147 : vector<1x32xf32> to vector<16x32xf32>
    %169 = arith.mulf %167, %168 : vector<16x32xf32>
    %170 = vector.broadcast %149 : vector<1x32xf32> to vector<16x32xf32>
    %171 = arith.addf %169, %170 : vector<16x32xf32>
    %172 = arith.truncf %171 : vector<16x32xf32> to vector<16x32xbf16>
    %c0_102 = arith.constant 0 : index
    %c0_103 = arith.constant 0 : index
    %c0_104 = arith.constant 0 : index
    %173 = vector.load %arg10[%c0_102, %c0_103, %c0_104] : memref<1x32x128xbf16, #tpu.memory_space<vmem>>, vector<1x32x128xbf16>
    %174 = vector.shape_cast %173 : vector<1x32x128xbf16> to vector<32x128xbf16>
    %cst_105 = arith.constant dense<0.000000e+00> : vector<16x128xf32>
    %175 = tpu.matmul %172, %174, %cst_105 {dimension_numbers = #tpu.dot_dimension_numbers<[1], [0], [0], [1], [0, 0, 1, 1], [], []>} : vector<16x32xbf16>, vector<32x128xbf16>, vector<16x128xf32> -> vector<16x128xf32>
    %c0_106 = arith.constant 0 : index
    %c0_107 = arith.constant 0 : index
    %c0_108 = arith.constant 0 : index
    %176 = vector.load %arg11[%c0_106, %c0_107, %c0_108] : memref<1x1x128xf32, #tpu.memory_space<vmem>>, vector<1x1x128xf32>
    %177 = vector.shape_cast %176 : vector<1x1x128xf32> to vector<1x128xf32>
    %178 = vector.broadcast %177 : vector<1x128xf32> to vector<16x128xf32>
    %179 = arith.addf %175, %178 : vector<16x128xf32>
    %cst_109 = arith.constant 1.702000e+00 : f32
    %180 = vector.broadcast %cst_109 : f32 to vector<16x128xf32>
    %181 = arith.mulf %180, %179 : vector<16x128xf32>
    %182 = arith.negf %181 : vector<16x128xf32>
    %183 = math.exp %182 : vector<16x128xf32>
    %cst_110 = arith.constant 1.000000e+00 : f32
    %184 = vector.broadcast %cst_110 : f32 to vector<16x128xf32>
    %185 = arith.addf %184, %183 : vector<16x128xf32>
    %186 = arith.divf %184, %185 : vector<16x128xf32>
    %187 = arith.mulf %179, %186 : vector<16x128xf32>
    %188 = arith.truncf %187 : vector<16x128xf32> to vector<16x128xbf16>
    %c0_111 = arith.constant 0 : index
    %c0_112 = arith.constant 0 : index
    %c0_113 = arith.constant 0 : index
    %189 = vector.load %arg12[%c0_111, %c0_112, %c0_113] : memref<1x128x32xbf16, #tpu.memory_space<vmem>>, vector<1x128x32xbf16>
    %190 = vector.shape_cast %189 : vector<1x128x32xbf16> to vector<128x32xbf16>
    %cst_114 = arith.constant dense<0.000000e+00> : vector<16x32xf32>
    %191 = tpu.matmul %188, %190, %cst_114 {dimension_numbers = #tpu.dot_dimension_numbers<[1], [0], [0], [1], [0, 0, 1, 1], [], []>} : vector<16x128xbf16>, vector<128x32xbf16>, vector<16x32xf32> -> vector<16x32xf32>
    %c0_115 = arith.constant 0 : index
    %c0_116 = arith.constant 0 : index
    %c0_117 = arith.constant 0 : index
    %192 = vector.load %arg13[%c0_115, %c0_116, %c0_117] : memref<1x1x32xf32, #tpu.memory_space<vmem>>, vector<1x1x32xf32>
    %193 = vector.shape_cast %192 : vector<1x1x32xf32> to vector<1x32xf32>
    %194 = vector.broadcast %193 : vector<1x32xf32> to vector<16x32xf32>
    %195 = arith.addf %191, %194 : vector<16x32xf32>
    %196 = arith.addf %145, %195 : vector<16x32xf32>
    %c1_i32 = arith.constant 1 : i32
    %197 = arith.cmpi slt, %arg0, %c1_i32 : i32
    %198 = arith.extui %197 : i1 to i32
    %c0_i32_118 = arith.constant 0 : i32
    %199 = arith.cmpi ne, %198, %c0_i32_118 : i32
    scf.if %199 {
      %c0_121 = arith.constant 0 : index
      %c0_122 = arith.constant 0 : index
      %203 = vector.load %arg17[%c0_121, %c0_122] : memref<16x32xf32, #tpu.memory_space<vmem>>, vector<16x32xf32>
      tpu.vector_store %arg17[%c0_121, %c0_122], %196 {strides = array<i32>} : memref<16x32xf32, #tpu.memory_space<vmem>>, vector<16x32xf32>,
    } else {
    }
    %c1_i32_119 = arith.constant 1 : i32
    %200 = arith.cmpi eq, %arg0, %c1_i32_119 : i32
    %201 = arith.extui %200 : i1 to i32
    %c0_i32_120 = arith.constant 0 : i32
    %202 = arith.cmpi ne, %201, %c0_i32_120 : i32
    scf.if %202 {
      %c0_121 = arith.constant 0 : index
      %c0_122 = arith.constant 0 : index
      %203 = vector.load %arg14[%c0_121, %c0_122] : memref<1x32xf32, #tpu.memory_space<vmem>>, vector<1x32xf32>
      %c0_123 = arith.constant 0 : index
      %c0_124 = arith.constant 0 : index
      %204 = vector.load %arg15[%c0_123, %c0_124] : memref<1x32xf32, #tpu.memory_space<vmem>>, vector<1x32xf32>
      %cst_125 = arith.constant dense<0.000000e+00> : vector<16xf32>
      %205 = vector.multi_reduction <add>, %196, %cst_125 [1] : vector<16x32xf32> to vector<16xf32>
      %206 = vector.shape_cast %205 : vector<16xf32> to vector<16x1xf32>
      %cst_126 = arith.constant 3.200000e+01 : f32
      %207 = vector.broadcast %cst_126 : f32 to vector<16x1xf32>
      %208 = arith.divf %206, %207 : vector<16x1xf32>
      %209 = vector.broadcast %208 : vector<16x1xf32> to vector<16x32xf32>
      %210 = arith.subf %196, %209 : vector<16x32xf32>
      %211 = arith.mulf %210, %210 : vector<16x32xf32>
      %cst_127 = arith.constant dense<0.000000e+00> : vector<16xf32>
      %212 = vector.multi_reduction <add>, %211, %cst_127 [1] : vector<16x32xf32> to vector<16xf32>
      %213 = vector.shape_cast %212 : vector<16xf32> to vector<16x1xf32>
      %cst_128 = arith.constant 3.200000e+01 : f32
      %214 = vector.broadcast %cst_128 : f32 to vector<16x1xf32>
      %215 = arith.divf %213, %214 : vector<16x1xf32>
      %216 = vector.broadcast %208 : vector<16x1xf32> to vector<16x32xf32>
      %217 = arith.subf %196, %216 : vector<16x32xf32>
      %cst_129 = arith.constant 9.99999974E-6 : f32
      %218 = vector.broadcast %cst_129 : f32 to vector<16x1xf32>
      %219 = arith.addf %215, %218 : vector<16x1xf32>
      %220 = math.rsqrt %219 : vector<16x1xf32>
      %221 = vector.broadcast %220 : vector<16x1xf32> to vector<16x32xf32>
      %222 = arith.mulf %217, %221 : vector<16x32xf32>
      %223 = vector.broadcast %203 : vector<1x32xf32> to vector<16x32xf32>
      %224 = arith.mulf %222, %223 : vector<16x32xf32>
      %225 = vector.broadcast %204 : vector<1x32xf32> to vector<16x32xf32>
      %226 = arith.addf %224, %225 : vector<16x32xf32>
      %c0_130 = arith.constant 0 : index
      %c0_131 = arith.constant 0 : index
      %227 = vector.load %arg16[%c0_130, %c0_131] : memref<16x32xf32, #tpu.memory_space<vmem>>, vector<16x32xf32>
      tpu.vector_store %arg16[%c0_130, %c0_131], %226 {strides = array<i32>} : memref<16x32xf32, #tpu.memory_space<vmem>>, vector<16x32xf32>,
    } else {
    }
    return
  }
  func.func @transform_0(%arg0: i32) -> (i32, i32) {
    %c0_i32 = arith.constant 0 : i32
    %c0_i32_0 = arith.constant 0 : i32
    %c0_i32_1 = arith.constant 0 : i32
    return %c0_i32, %c0_i32_0 : i32, i32
  }
  func.func @transform_1(%arg0: i32) -> (i32, i32, i32) {
    %c0_i32 = arith.constant 0 : i32
    %c0_i32_0 = arith.constant 0 : i32
    %c0_i32_1 = arith.constant 0 : i32
    return %arg0, %c0_i32, %c0_i32_0 : i32, i32, i32
  }
  func.func @transform_2(%arg0: i32) -> (i32, i32, i32) {
    %c0_i32 = arith.constant 0 : i32
    %c0_i32_0 = arith.constant 0 : i32
    %c0_i32_1 = arith.constant 0 : i32
    return %arg0, %c0_i32, %c0_i32_0 : i32, i32, i32
  }
  func.func @transform_3(%arg0: i32) -> (i32, i32, i32) {
    %c0_i32 = arith.constant 0 : i32
    %c0_i32_0 = arith.constant 0 : i32
    %c0_i32_1 = arith.constant 0 : i32
    return %arg0, %c0_i32, %c0_i32_0 : i32, i32, i32
  }
  func.func @transform_4(%arg0: i32) -> (i32, i32, i32) {
    %c0_i32 = arith.constant 0 : i32
    %c0_i32_0 = arith.constant 0 : i32
    %c0_i32_1 = arith.constant 0 : i32
    return %arg0, %c0_i32, %c0_i32_0 : i32, i32, i32
  }
  func.func @transform_5(%arg0: i32) -> (i32, i32, i32) {
    %c0_i32 = arith.constant 0 : i32
    %c0_i32_0 = arith.constant 0 : i32
    %c0_i32_1 = arith.constant 0 : i32
    return %arg0, %c0_i32, %c0_i32_0 : i32, i32, i32
  }
  func.func @transform_6(%arg0: i32) -> (i32, i32, i32) {
    %c0_i32 = arith.constant 0 : i32
    %c0_i32_0 = arith.constant 0 : i32
    %c0_i32_1 = arith.constant 0 : i32
    return %arg0, %c0_i32, %c0_i32_0 : i32, i32, i32
  }
  func.func @transform_7(%arg0: i32) -> (i32, i32, i32) {
    %c0_i32 = arith.constant 0 : i32
    %c0_i32_0 = arith.constant 0 : i32
    %c0_i32_1 = arith.constant 0 : i32
    return %arg0, %c0_i32, %c0_i32_0 : i32, i32, i32
  }
  func.func @transform_8(%arg0: i32) -> (i32, i32, i32) {
    %c0_i32 = arith.constant 0 : i32
    %c0_i32_0 = arith.constant 0 : i32
    %c0_i32_1 = arith.constant 0 : i32
    return %arg0, %c0_i32, %c0_i32_0 : i32, i32, i32
  }
  func.func @transform_9(%arg0: i32) -> (i32, i32, i32) {
    %c0_i32 = arith.constant 0 : i32
    %c0_i32_0 = arith.constant 0 : i32
    %c0_i32_1 = arith.constant 0 : i32
    return %arg0, %c0_i32, %c0_i32_0 : i32, i32, i32
  }
  func.func @transform_10(%arg0: i32) -> (i32, i32, i32) {
    %c0_i32 = arith.constant 0 : i32
    %c0_i32_0 = arith.constant 0 : i32
    %c0_i32_1 = arith.constant 0 : i32
    return %arg0, %c0_i32, %c0_i32_0 : i32, i32, i32
  }
  func.func @transform_11(%arg0: i32) -> (i32, i32, i32) {
    %c0_i32 = arith.constant 0 : i32
    %c0_i32_0 = arith.constant 0 : i32
    %c0_i32_1 = arith.constant 0 : i32
    return %arg0, %c0_i32, %c0_i32_0 : i32, i32, i32
  }
  func.func @transform_12(%arg0: i32) -> (i32, i32, i32) {
    %c0_i32 = arith.constant 0 : i32
    %c0_i32_0 = arith.constant 0 : i32
    %c0_i32_1 = arith.constant 0 : i32
    return %arg0, %c0_i32, %c0_i32_0 : i32, i32, i32
  }
  func.func @transform_13(%arg0: i32) -> (i32, i32) {
    %c0_i32 = arith.constant 0 : i32
    %c0_i32_0 = arith.constant 0 : i32
    %c0_i32_1 = arith.constant 0 : i32
    return %c0_i32, %c0_i32_0 : i32, i32
  }
  func.func @transform_14(%arg0: i32) -> (i32, i32) {
    %c0_i32 = arith.constant 0 : i32
    %c0_i32_0 = arith.constant 0 : i32
    %c0_i32_1 = arith.constant 0 : i32
    return %c0_i32, %c0_i32_0 : i32, i32
  }
  func.func @transform_15(%arg0: i32) -> (i32, i32) {
    %c0_i32 = arith.constant 0 : i32
    %c0_i32_0 = arith.constant 0 : i32
    %c0_i32_1 = arith.constant 0 : i32
    return %c0_i32, %c0_i32_0 : i32, i32
  }
}

</mosaic_0001>

<bundles_post_ra>
// kernel: tpu_custom_call.1
= control target key start
LH: loop header
LB: loop body
LE: loop exit
PB: predicated region body
PF: predicated region fallthrough
CT: control target
= control target key end

     0   :  { %s3138_s0 = inlined_call_operand.vmem [shape: f32[16,32], index: 0, kind: input, shape index: {}]   ;;  %s3139_s1 = inlined_call_operand.vmem [shape: f32[2,1,32], index: 1, kind: input, shape index: {}]   ;;  %s3140_s2 = inlined_call_operand.vmem [shape: f32[2,1,32], index: 2, kind: input, shape index: {}]   ;;  %s3141_s3 = inlined_call_operand.vmem [shape: bf16[2,32,96], index: 3, kind: input, shape index: {}]   ;;  %s3142_s4 = inlined_call_operand.vmem [shape: f32[2,1,96], index: 4, kind: input, shape index: {}]   ;;  %s3143_s5 = inlined_call_operand.vmem [shape: bf16[2,32,32], index: 5, kind: input, shape index: {}]   ;;  %s3144_s6 = inlined_call_operand.vmem [shape: f32[2,1,32], index: 6, kind: input, shape index: {}]   ;;  %s3145_s7 = inlined_call_operand.vmem [shape: f32[2,1,32], index: 7, kind: input, shape index: {}]   ;;  %s3146_s8 = inlined_call_operand.vmem [shape: f32[2,1,32], index: 8, kind: input, shape index: {}]   ;;  %s3147_s9 = inlined_call_operand.vmem [shape: bf16[2,32,128], index: 9, kind: input, shape index: {}]   ;;  %s3148_s10 = inlined_call_operand.vmem [shape: f32[2,1,128], index: 10, kind: input, shape index: {}]   ;;  %s3149_s11 = inlined_call_operand.vmem [shape: bf16[2,128,32], index: 11, kind: input, shape index: {}]   ;;  %s3150_s12 = inlined_call_operand.vmem [shape: f32[2,1,32], index: 12, kind: input, shape index: {}]   ;;  %s3151_s13 = inlined_call_operand.vmem [shape: f32[1,32], index: 13, kind: input, shape index: {}]   ;;  %s3152_s14 = inlined_call_operand.vmem [shape: f32[1,32], index: 14, kind: input, shape index: {}]   ;;  %s3153_s15 = inlined_call_operand.hbm [shape: f32[16,32], index: 15, kind: output, shape index: {}]  }
   0x1   :  { %3157 = sst [smem:[#allocation11_spill]] %s3141_s3 }
   0x2   :  { %3158 = sst [smem:[#allocation12_spill]] %s3143_s5 }
   0x3   :  { %3159 = sst [smem:[#allocation13_spill]] %s3151_s13 }
   0x4   :  { %3160 = sst [smem:[#allocation14_spill]] %s3152_s14 }
   0x5   :  { %3161 = sst [smem:[#allocation15_spill]] %s3153_s15 }
   0x6   :  { %20 = vsyncpa [#allocation7], 0  ;;  %s2765_s18 = smov 0  }
   0x7 LB: > { %3162 = sst [smem:[#allocation9_spill]] %s2664_s18  ;;  %s2771_s19 = sadd.s32 4294967295, %s2664_s18   ;;  %s2664_s18 = sphi %s2765_s18, %s26_s18  }
   0x8   : > { %p2274_p0 = scmp.ge.s32.totalorder %s2664_s18, 1  ;;  %p527_p1 = scmp.lt.s32.totalorder %s2664_s18, 3 }
   0xa   : > { %p528_p2 = pnand %p2274_p0, %p527_p1 }
   0xc   : > { %531 = sbr.rel (%p528_p2) target bundleno = 4551 (0x11c7), region = 80 }
  0x13   : > { %p609_p3 = scmp.lt.s32.totalorder %s2771_s19, 1  ;;  %s3163_s3 = sld [smem:[#allocation11_spill]] }
  0x14   : > { %s3164_s5 = sld [smem:[#allocation12_spill]]  ;;  %p2283_p4 = scmp.ne.s32.totalorder %s2771_s19, 0 }
  0x15   : > { %s2777_s20 = scalar_select %p609_p3, %s2771_s19, 1 }
  0x16   : > { %657 = sbr.rel (%p2283_p4) target bundleno = 29 (0x1d), region = 84  ;;  %v658_v0 = vld [vmem:[%s3138_s0] sm:$0xff] (!%p2283_p4)  ;;  %vm660_vm0 = vcmask (!%p2283_p4), 261120   ;;  %v659_v1 = vld [vmem:[%s3138_s0 + $0x8] sm:$0xff] (!%p2283_p4)  ;;  %v663_v2 = vlaneseq (!%p2283_p4)  ;;  %vm669_vm1 = vcmask (!%p2283_p4), 64512  }
  0x17   : > { %s2335_s27 = sshll.u32 %s2777_s20, 4  ;;  %s633_s13 = scalar_lea.vmem %s3145_s7, %s2777_s20  ;;  %661 = vst.msk [vmem:[#allocation2] sm:$0xff] (!%p2283_p4), %vm660_vm0, %v658_v0  ;;  %662 = vst.msk [vmem:[#allocation2 + $0x8] sm:$0xff] (!%p2283_p4), %vm660_vm0, %v659_v1  ;;  %v2666_v5 = vmov (!%p2283_p4), -1e+30  }
  0x18   : > { %s636_s30 = scalar_lea.vmem %s3146_s8, %s2777_s20  ;;  %s652_s28 = scalar_lea.vmem %s3150_s12, %s2777_s20  ;;  %v664_v3 = vshrl.u32 (!%p2283_p4), %v663_v2, 7  ;;  %v666_v4 = vand.u32 (!%p2283_p4), 127, %v663_v2 }
  0x19   : > { %s2795_s21 = scalar_lea.vmem %s3163_s3, %s2335_s27  ;;  %s2817_s3 = scalar_lea.vmem %s3147_s9, %s2335_s27 }
  0x1a   : > { %s2800_s15 = scalar_lea.vmem %s3164_s5, %s2335_s27  ;;  %s644_s5 = scalar_lea.vmem %s3148_s10, %s2777_s20  ;;  %vm667_vm2 = vcmp.le.s32.totalorder (!%p2283_p4), %v666_v4, %v664_v3 }
  0x1b   : > { %3165 = sst [smem:[#allocation10_spill]] %s2800_s15  ;;  %s2338_s15 = sshll.u32 %s2777_s20, 6  ;;  %v668_v6 = vsel (!%p2283_p4), %vm667_vm2, 0.0, %v2666_v5 }
  0x1c   : > { %s2827_s24 = scalar_lea.vmem %s3149_s11, %s2338_s15  ;;  %670 = vst.msk [vmem:[#allocation5] sm:$0xff] (!%p2283_p4), %vm669_vm1, %v668_v6 }
  0x1d PF: > { %vm675_vm3 = vcmask 261120   ;;  %v2562_v21 = vld [vmem:[%s2795_s21] sm:$0xff]   ;;  %v2667_v22 = vmov 0.0   ;;  %v2563_v23 = vld [vmem:[%s2795_s21 + $0x8] sm:$0xff]   ;;  %vm2668_vm4 = vmmov 0   ;;  %s3166_s18 = scalar_lea.vmem %s3139_s1, %s2777_s20  ;;  %s3167_s23 = scalar_lea.vmem %s3140_s2, %s2777_s20  ;;  %vm787_vm5 = vcmask 785408  }
  0x1e   : > { %v2840_v7 = vld [vmem:[#allocation2] sm:$0xff]  ;;  %v2842_v8 = vld [vmem:[#allocation2 + $0x8] sm:$0xff]  ;;  %2389 = vmatprep.subr.bf16.mxu0 %v2667_v22  ;;  %2409 = vmatprep.subr.bf16.mxu1 %v2667_v22  ;;  %s3168_s29 = scalar_lea.vmem %s3142_s4, %s2777_s20  ;;  %s2669_s27 = smov 96   ;;  %vm798_vm6 = vcmask 64512   ;;  %vm927_vm7 = vcmask 1043456   ;;  %vm1259_vm8 = vcmask 130112  }
  0x1f   : > { %v676_v9 = vsel %vm675_vm3, %v2840_v7, 0.0  ;;  %v679_v10 = vsel %vm675_vm3, %v2842_v8, 0.0  ;;  %2390 = vmatpush3.bf16.msra.mxu0 %v2562_v21  ;;  %2393 = vmatprep.mubr.msk.bf16.mxu0 %vm2668_vm4, %v2667_v22  ;;  %v2284_v32 = vld [vmem:[%s3166_s18] ss:$0 sm:$0xff]  ;;  %s2670_s16 = smov 64   ;;  %s2671_s17 = smov 88  }
  0x20   : > { %677 = vadd.xlane.f32.xlu0 %v676_v9  ;;  %2391 = vmatprep.subr.bf16.mxu0 %v2667_v22  ;;  %v2285_v36 = vld [vmem:[%s3167_s23] ss:$0 sm:$0xff]  ;;  %s2672_s15 = smov 120   ;;  %s2673_s21 = smov 56   ;;  %vm1500_vm9 = vcmask 195712   ;;  %vm1741_vm10 = vcmask 261312  }
  0x21   : > { %2411 = vmatprep.mubr.msk.bf16.mxu1 %vm2668_vm4, %v2667_v22  ;;  %v2286_v41 = vld [vmem:[%s3168_s29] ss:$0 sm:$0xff]  ;;  %s2674_s18 = smov 80   ;;  %s2675_s22 = smov 112  }
  0x22   : > { %s2676_s14 = smov 48   ;;  %s2677_s23 = smov 72  }
  0x23   : > { %2392 = vmatpush3.bf16.msra.mxu0 %v2563_v23  ;;  %v2898_v57 = vld [vmem:[#allocation5] sm:$0xff]  ;;  %s2678_s26 = smov 104   ;;  %s2679_s25 = smov 40  }
  0x24   : > { %680 = vadd.xlane.f32.xlu0 %v679_v10  ;;  %2397 = vmatprep.subr.bf16.mxu0 %v2667_v22  ;;  %s2680_s29 = smov 8   ;;  %p2327_p5 = scmp.ge.s32.totalorder %s2771_s19, 1 }
  0xad   : > { %v678_v11 = vpop.xlane.xlu0 %677 }
  0xae   : > { %v683_v12 = vmul.f32 0.03125, %v678_v11 }
  0xb0   : > { %v685_v13 = vsub.f32 %v2840_v7, %v683_v12 }
  0xb1   : > { %v681_v14 = vpop.xlane.xlu0 %680 }
  0xb2   : > { %v684_v15 = vmul.f32 0.03125, %v681_v14  ;;  %v687_v16 = vmul.f32 %v685_v13, %v685_v13 }
  0xb4   : > { %v686_v17 = vsub.f32 %v2842_v8, %v684_v15  ;;  %v689_v18 = vsel %vm675_vm3, %v687_v16, 0.0 }
  0xb5   : > { %690 = vadd.xlane.f32.xlu1 %v689_v18 }
  0xb6   : > { %v688_v19 = vmul.f32 %v686_v17, %v686_v17 }
  0xb8   : > { %v692_v20 = vsel %vm675_vm3, %v688_v19, 0.0 }
  0xb9   : > { %693 = vadd.xlane.f32.xlu1 %v692_v20 }
 0x142   : > { %v691_v24 = vpop.xlane.xlu1 %690 }
 0x143   : > { %v695_v25 = vmul.f32 0.03125, %v691_v24 }
 0x145   : > { %v697_v26 = vadd.f32 1e-05, %v695_v25 }
 0x146   : > { %v694_v27 = vpop.xlane.xlu1 %693 }
 0x147   : > { %2576 = vrsqrt.f32 %v697_v26  ;;  %v696_v28 = vmul.f32 0.03125, %v694_v27 }
 0x149   : > { %v698_v29 = vadd.f32 1e-05, %v696_v28 }
 0x14b   : > { %2578 = vrsqrt.f32 %v698_v29 }
 0x151   : > { %v2577_v30 = vpop.eup %2576 }
 0x152   : > { %v701_v31 = vmul.f32 %v2577_v30, %v685_v13 }
 0x154   : > { %v709_v35 = vmul.f32 %v2284_v32, %v701_v31 }
 0x155   : > { %v2579_v33 = vpop.eup %2578 }
 0x156   : > { %v702_v34 = vmul.f32 %v2579_v33, %v686_v17  ;;  %v717_v38 = vadd.f32 %v2285_v36, %v709_v35 }
 0x158   : > { %v710_v37 = vmul.f32 %v2284_v32, %v702_v34 }
 0x15a   : > { %v718_v39 = vadd.f32 %v2285_v36, %v710_v37 }
 0x15c   : > { %v719_v40 = vpack.c.bf16 %v718_v39, %v717_v38 }
 0x15e   : > { %2394 = vmatmul.mubr.msk.bf16.vlgmr.msra.gmra.mrb[0].mxu0 %vm675_vm3, %v719_v40 }
 0x15f   : > { %2399 = vmatprep.mubr.msk.bf16.mxu0 %vm2668_vm4, %v2667_v22 }
 0x231   : > { %v780_v42 = vpop.f32.mrb[0].mxu0 }
 0x232   : > { %v781_v43 = vadd.f32 %v2286_v41, %v780_v42  ;;  %v2395_v44 = vpop.f32.mrb[1].mxu0 }
 0x233   : > { %v783_v45 = vpop.f32.mrb[2].mxu0 }
 0x234   : > { %788 = vst.msk [vmem:[#allocation3] sm:$0xff] %vm787_vm5, %v781_v43  ;;  %v784_v46 = vadd.f32 %v2286_v41, %v783_v45  ;;  %v2396_v47 = vpop.f32.mrb[3].mxu0 }
 0x236   : > { %789 = vst.msk [vmem:[#allocation3 + $0x8] sm:$0xff] %vm787_vm5, %v784_v46 }
 0x23b   : > { %v791_v48 = vld [vmem:[#allocation3] sm:$0xff] }
 0x23c   : > { %v2880_v49 = vpack.c.bf16 %v791_v48, %v791_v48 }
 0x23d   : > { %v792_v50 = vld [vmem:[#allocation3 + $0x8] sm:$0xff] }
 0x23e   : > { %796 = vrot.lane.b32.xlu0 %v2880_v49, %s2669_s27  ;;  %v2883_v51 = vpack.c.bf16 %v792_v50, %v792_v50 }
 0x240   : > { %846 = vrot.lane.b32.xlu1 %v2883_v51, %s2669_s27  ;;  %s2681_s27 = smov 16  }
 0x2b0   : > { %v797_v52 = vpop.permute.xlu0 %796 }
 0x2b1   : > { %v803_v53 = vsel %vm798_vm6, %v797_v52, 0 }
 0x2b2   : > { %2398 = vmatpush3.bf16.xpose.msra.mxu0 %v803_v53  ;;  %v847_v54 = vpop.permute.xlu1 %846 }
 0x2b3   : > { %2403 = vmatprep.subr.bf16.mxu0 %v2667_v22  ;;  %v852_v55 = vsel %vm798_vm6, %v847_v54, 0 }
 0x2b9   : > { %2400 = vmatmul.mubr.msk.bf16.vlgmr.msra.gmra.mrb[4].mxu0 %vm798_vm6, %v2880_v49 }
 0x2ba   : > { %2404 = vmatpush3.bf16.xpose.msra.mxu0 %v852_v55  ;;  %2405 = vmatprep.mubr.msk.bf16.mxu0 %vm2668_vm4, %v2667_v22 }
 0x2bb   : > { %2415 = vmatprep.subr.bf16.mxu0 %v2667_v22 }
 0x2c1   : > { %2406 = vmatmul.mubr.msk.bf16.vlgmr.msra.gmra.mrb[8].mxu0 %vm798_vm6, %v2883_v51 }
 0x2c2   : > { %2417 = vmatprep.mubr.msk.bf16.mxu0 %vm2668_vm4, %v2667_v22 }
 0x38c   : > { %v839_v56 = vpop.f32.mrb[4].mxu0 }
 0x38d   : > { %v894_v58 = vmul.f32 0.35355338, %v839_v56  ;;  %v2401_v59 = vpop.f32.mrb[5].mxu0 }
 0x38e   : > { %v842_v60 = vpop.f32.mrb[6].mxu0 }
 0x38f   : > { %v2402_v61 = vpop.f32.mrb[7].mxu0  ;;  %v896_v62 = vadd.f32 %v894_v58, %v2898_v57 }
 0x391   : > { %v898_v63 = vsel %vm798_vm6, %v896_v62, -inf }
 0x392   : > { %899 = vmax.xlane.f32.xlu1 %v898_v63 }
 0x394   : > { %v888_v0 = vpop.f32.mrb[8].mxu0 }
 0x395   : > { %v895_v1 = vmul.f32 0.35355338, %v888_v0  ;;  %v2407_v2 = vpop.f32.mrb[9].mxu0 }
 0x396   : > { %v891_v3 = vpop.f32.mrb[10].mxu0 }
 0x397   : > { %v2408_v4 = vpop.f32.mrb[11].mxu0  ;;  %v897_v5 = vadd.f32 %v895_v1, %v2898_v57 }
 0x399   : > { %v901_v6 = vsel %vm798_vm6, %v897_v5, -inf }
 0x39a   : > { %902 = vmax.xlane.f32.xlu0 %v901_v6 }
 0x3a3   : > { %971 = vrot.lane.b32.xlu1 %v2883_v51, %s2670_s16 }
 0x3a7   : > { %1028 = vrot.lane.b32.xlu1 %v2880_v49, %s2671_s17 }
 0x41f   : > { %v900_v9 = vpop.xlane.xlu1 %899 }
 0x420   : > { %v904_v10 = vsub.f32 %v896_v62, %v900_v9 }
 0x422   : > { %v906_v11 = vmul.f32 1.442695, %v904_v10 }
 0x423   : > { %v972_v12 = vpop.permute.xlu1 %971 }
 0x424   : > { %2580 = vpow2.f32 %v906_v11  ;;  %v977_v13 = vsel %vm927_vm7, %v972_v12, 0 }
 0x425   : > { %2416 = vmatpush3.bf16.msra.mxu0 %v977_v13 }
 0x426   : > { %2427 = vmatprep.subr.bf16.mxu0 %v2667_v22 }
 0x427   : > { %v903_v14 = vpop.xlane.xlu0 %902  ;;  %v1029_v23 = vpop.permute.xlu1 %1028 }
 0x428   : > { %v905_v15 = vsub.f32 %v897_v5, %v903_v14  ;;  %v1034_v30 = vsel %vm798_vm6, %v1029_v23, 0 }
 0x42a   : > { %v908_v16 = vmul.f32 1.442695, %v905_v15 }
 0x42c   : > { %2582 = vpow2.f32 %v908_v16 }
 0x42e   : > { %v2581_v17 = vpop.eup %2580 }
 0x42f   : > { %v910_v18 = vsel %vm798_vm6, %v2581_v17, 0.0 }
 0x430   : > { %911 = vadd.xlane.f32.xlu0 %v910_v18 }
 0x436   : > { %v2583_v19 = vpop.eup %2582 }
 0x437   : > { %v913_v20 = vsel %vm798_vm6, %v2583_v19, 0.0 }
 0x438   : > { %914 = vadd.xlane.f32.xlu1 %v913_v20 }
 0x446   : > { %922 = vrot.lane.b32.xlu0 %v2880_v49, %s2670_s16  ;;  %s3169_s16 = sld [smem:[#allocation10_spill]] }
 0x449   : > { %1079 = vrot.lane.b32.xlu1 %v2883_v51, %s2671_s17  ;;  %s2682_s17 = smov 24  }
 0x44a   : > { %1026 = vrot.lane.b32.xlu0 %v2880_v49, %s2672_s15 }
 0x44d   : > { %1077 = vrot.lane.b32.xlu1 %v2883_v51, %s2672_s15 }
 0x4bd   : > { %v912_v21 = vpop.xlane.xlu0 %911 }
 0x4be   : > { %2584 = vrcp.f32 %v912_v21 }
 0x4c1   : > { %v923_v24 = vpop.permute.xlu0 %922 }
 0x4c2   : > { %v929_v25 = vsel %vm927_vm7, %v923_v24, 0 }
 0x4c3   : > { %2410 = vmatpush3.bf16.msra.mxu1 %v929_v25 }
 0x4c4   : > { %2421 = vmatprep.subr.bf16.mxu1 %v2667_v22 }
 0x4c5   : > { %v915_v26 = vpop.xlane.xlu1 %914  ;;  %v1027_v35 = vpop.permute.xlu0 %1026 }
 0x4c6   : > { %2586 = vrcp.f32 %v915_v26 }
 0x4c8   : > { %v2585_v27 = vpop.eup %2584 }
 0x4c9   : > { %v918_v28 = vmul.f32 %v2585_v27, %v2581_v17  ;;  %v1080_v33 = vpop.permute.xlu1 %1079 }
 0x4ca   : > { %v1085_v36 = vsel %vm798_vm6, %v1080_v33, 0 }
 0x4cb   : > { %v920_v29 = vpack.c.bf16 %v918_v28, %v918_v28 }
 0x4cd   : > { %2412 = vmatmul.mubr.msk.bf16.vlgmr.msra.gmra.mrb[0].mxu1 %vm798_vm6, %v920_v29  ;;  %v1078_v37 = vpop.permute.xlu1 %1077 }
 0x4ce   : > { %2422 = vmatpush3.bf16.xpose.msra.mxu1 %v1034_v30  ;;  %2423 = vmatprep.mubr.msk.bf16.mxu1 %vm2668_vm4, %v2667_v22 }
 0x4cf   : > { %2433 = vmatprep.subr.bf16.mxu1 %v2667_v22 }
 0x4d0   : > { %v2587_v31 = vpop.eup %2586 }
 0x4d1   : > { %v919_v32 = vmul.f32 %v2587_v31, %v2583_v19 }
 0x4d3   : > { %v921_v34 = vpack.c.bf16 %v919_v32, %v919_v32 }
 0x4d5   : > { %2418 = vmatmul.mubr.msk.bf16.vlgmr.msra.gmra.mrb[12].mxu0 %vm798_vm6, %v921_v34  ;;  %2424 = vmatmul.mubr.msk.bf16.vlgmr.msra.gmra.mrb[4].mxu1 %vm798_vm6, %v1027_v35 }
 0x4d6   : > { %2428 = vmatpush3.bf16.xpose.msra.mxu0 %v1085_v36  ;;  %2429 = vmatprep.mubr.msk.bf16.mxu0 %vm2668_vm4, %v2667_v22 }
 0x4d7   : > { %2439 = vmatprep.subr.bf16.mxu0 %v2667_v22  ;;  %2435 = vmatprep.mubr.msk.bf16.mxu1 %vm2668_vm4, %v2667_v22 }
 0x4dd   : > { %2430 = vmatmul.mubr.msk.bf16.vlgmr.msra.gmra.mrb[16].mxu0 %vm798_vm6, %v1078_v37 }
 0x4de   : > { %2441 = vmatprep.mubr.msk.bf16.mxu0 %vm2668_vm4, %v2667_v22 }
 0x5a0   : > { %v965_v38 = vpop.f32.mrb[0].mxu1 }
 0x5a1   : > { %1019 = vst.msk [vmem:[#allocation4] sm:$0xff] %vm798_vm6, %v965_v38  ;;  %v2413_v39 = vpop.f32.mrb[1].mxu1 }
 0x5a2   : > { %v968_v40 = vpop.f32.mrb[2].mxu1 }
 0x5a3   : > { %v2414_v41 = vpop.f32.mrb[3].mxu1 }
 0x5a8   : > { %v1013_v42 = vpop.f32.mrb[12].mxu0  ;;  %v1070_v43 = vpop.f32.mrb[4].mxu1 }
 0x5a9   : > { %1020 = vst.msk [vmem:[#allocation4 + $0x8] sm:$0xff] %vm798_vm6, %v1013_v42  ;;  %v1127_v44 = vmul.f32 0.35355338, %v1070_v43  ;;  %v2419_v45 = vpop.f32.mrb[13].mxu0  ;;  %v2425_v46 = vpop.f32.mrb[5].mxu1 }
 0x5aa   : > { %v1016_v47 = vpop.f32.mrb[14].mxu0  ;;  %v1073_v48 = vpop.f32.mrb[6].mxu1 }
 0x5ab   : > { %v2420_v50 = vpop.f32.mrb[15].mxu0  ;;  %v2426_v52 = vpop.f32.mrb[7].mxu1  ;;  %v1129_v53 = vadd.f32 %v1127_v44, %v2898_v57 }
 0x5ad   : > { %v1131_v54 = vsel %vm798_vm6, %v1129_v53, -inf }
 0x5ae   : > { %1132 = vmax.xlane.f32.xlu0 %v1131_v54 }
 0x5b0   : > { %v1121_v55 = vpop.f32.mrb[16].mxu0 }
 0x5b1   : > { %v1128_v56 = vmul.f32 0.35355338, %v1121_v55  ;;  %v2431_v58 = vpop.f32.mrb[17].mxu0 }
 0x5b2   : > { %v1124_v59 = vpop.f32.mrb[18].mxu0 }
 0x5b3   : > { %v2432_v60 = vpop.f32.mrb[19].mxu0  ;;  %v1130_v61 = vadd.f32 %v1128_v56, %v2898_v57 }
 0x5b5   : > { %v1134_v62 = vsel %vm798_vm6, %v1130_v61, -inf }
 0x5b6   : > { %1135 = vmax.xlane.f32.xlu1 %v1134_v62 }
 0x5c7   : > { %1203 = vrot.lane.b32.xlu1 %v2883_v51, %s2673_s21 }
 0x5cb   : > { %1269 = vrot.lane.b32.xlu1 %v2880_v49, %s2674_s18 }
 0x5cf   : > { %1320 = vrot.lane.b32.xlu1 %v2883_v51, %s2674_s18  ;;  %s3170_s18 = scalar_lea.vmem %s3144_s6, %s2777_s20 }
 0x5d3   : > { %1318 = vrot.lane.b32.xlu1 %v2883_v51, %s2675_s22 }
 0x63b   : > { %v1133_v63 = vpop.xlane.xlu0 %1132 }
 0x63c   : > { %v1137_v0 = vsub.f32 %v1129_v53, %v1133_v63 }
 0x63e   : > { %v1139_v1 = vmul.f32 1.442695, %v1137_v0 }
 0x640   : > { %2588 = vpow2.f32 %v1139_v1 }
 0x643   : > { %v1136_v2 = vpop.xlane.xlu1 %1135 }
 0x644   : > { %v1138_v3 = vsub.f32 %v1130_v61, %v1136_v2 }
 0x646   : > { %v1141_v4 = vmul.f32 1.442695, %v1138_v3 }
 0x647   : > { %v1204_v5 = vpop.permute.xlu1 %1203 }
 0x648   : > { %2590 = vpow2.f32 %v1141_v4  ;;  %v1209_v6 = vsel %vm927_vm7, %v1204_v5, 0 }
 0x649   : > { %2440 = vmatpush3.bf16.msra.mxu0 %v1209_v6 }
 0x64a   : > { %v2589_v9 = vpop.eup %2588  ;;  %2451 = vmatprep.subr.bf16.mxu0 %v2667_v22 }
 0x64b   : > { %v1143_v10 = vsel %vm798_vm6, %v2589_v9, 0.0  ;;  %v1270_v20 = vpop.permute.xlu1 %1269 }
 0x64c   : > { %1144 = vadd.xlane.f32.xlu0 %v1143_v10  ;;  %v1275_v25 = vsel %vm798_vm6, %v1270_v20, 0 }
 0x64f   : > { %v1321_v24 = vpop.permute.xlu1 %1320 }
 0x650   : > { %v1326_v27 = vsel %vm798_vm6, %v1321_v24, 0 }
 0x652   : > { %v2591_v11 = vpop.eup %2590 }
 0x653   : > { %v1146_v12 = vsel %vm798_vm6, %v2591_v11, 0.0  ;;  %v1319_v29 = vpop.permute.xlu1 %1318 }
 0x654   : > { %1147 = vadd.xlane.f32.xlu0 %v1146_v12 }
 0x66a   : > { %1155 = vrot.lane.b32.xlu0 %v2880_v49, %s2673_s21 }
 0x66e   : > { %1267 = vrot.lane.b32.xlu0 %v2880_v49, %s2675_s22 }
 0x6d9   : > { %v1145_v13 = vpop.xlane.xlu0 %1144 }
 0x6da   : > { %2592 = vrcp.f32 %v1145_v13 }
 0x6e1   : > { %v1148_v14 = vpop.xlane.xlu0 %1147 }
 0x6e2   : > { %2594 = vrcp.f32 %v1148_v14 }
 0x6e4   : > { %v2593_v15 = vpop.eup %2592 }
 0x6e5   : > { %v1151_v16 = vmul.f32 %v2593_v15, %v2589_v9  ;;  %v1156_v17 = vpop.permute.xlu0 %1155 }
 0x6e6   : > { %v1161_v18 = vsel %vm927_vm7, %v1156_v17, 0 }
 0x6e7   : > { %2434 = vmatpush3.bf16.msra.mxu1 %v1161_v18  ;;  %v1153_v19 = vpack.c.bf16 %v1151_v16, %v1151_v16 }
 0x6e8   : > { %2445 = vmatprep.subr.bf16.mxu1 %v2667_v22 }
 0x6e9   : > { %v1268_v28 = vpop.permute.xlu0 %1267 }
 0x6ea   : > { %2436 = vmatmul.mubr.msk.bf16.vlgmr.msra.gmra.mrb[8].mxu1 %vm798_vm6, %v1153_v19 }
 0x6eb   : > { %2447 = vmatprep.mubr.msk.bf16.mxu1 %vm2668_vm4, %v2667_v22 }
 0x6ec   : > { %v2595_v21 = vpop.eup %2594 }
 0x6ed   : > { %v1152_v23 = vmul.f32 %v2595_v21, %v2591_v11 }
 0x6ef   : > { %v1154_v26 = vpack.c.bf16 %v1152_v23, %v1152_v23 }
 0x6f0   : > { %2446 = vmatpush3.bf16.xpose.msra.mxu1 %v1275_v25 }
 0x6f1   : > { %2442 = vmatmul.mubr.msk.bf16.vlgmr.msra.gmra.mrb[20].mxu0 %vm798_vm6, %v1154_v26  ;;  %2457 = vmatprep.subr.bf16.mxu1 %v2667_v22 }
 0x6f2   : > { %2452 = vmatpush3.bf16.xpose.msra.mxu0 %v1326_v27  ;;  %2453 = vmatprep.mubr.msk.bf16.mxu0 %vm2668_vm4, %v2667_v22 }
 0x6f3   : > { %2463 = vmatprep.subr.bf16.mxu0 %v2667_v22 }
 0x6f7   : > { %2448 = vmatmul.mubr.msk.bf16.vlgmr.msra.gmra.mrb[12].mxu1 %vm798_vm6, %v1268_v28 }
 0x6f8   : > { %2459 = vmatprep.mubr.msk.bf16.mxu1 %vm2668_vm4, %v2667_v22 }
 0x6f9   : > { %2454 = vmatmul.mubr.msk.bf16.vlgmr.msra.gmra.mrb[24].mxu0 %vm798_vm6, %v1319_v29 }
 0x6fa   : > { %2465 = vmatprep.mubr.msk.bf16.mxu0 %vm2668_vm4, %v2667_v22 }
 0x7bd   : > { %v2966_v30 = vpop.f32.mrb[8].mxu1 }
 0x7be   : > { %v2437_v31 = vpop.f32.mrb[9].mxu1 }
 0x7bf   : > { %v1200_v32 = vpop.f32.mrb[10].mxu1 }
 0x7c0   : > { %v2438_v33 = vpop.f32.mrb[11].mxu1 }
 0x7c4   : > { %v2968_v34 = vpop.f32.mrb[20].mxu0 }
 0x7c5   : > { %v2443_v35 = vpop.f32.mrb[21].mxu0 }
 0x7c6   : > { %v1248_v36 = vpop.f32.mrb[22].mxu0 }
 0x7c7   : > { %v2444_v37 = vpop.f32.mrb[23].mxu0 }
 0x7ca   : > { %v1311_v38 = vpop.f32.mrb[12].mxu1 }
 0x7cb   : > { %v1368_v39 = vmul.f32 0.35355338, %v1311_v38  ;;  %v2449_v40 = vpop.f32.mrb[13].mxu1 }
 0x7cc   : > { %v1314_v41 = vpop.f32.mrb[14].mxu1  ;;  %v1362_v42 = vpop.f32.mrb[24].mxu0 }
 0x7cd   : > { %v1369_v43 = vmul.f32 0.35355338, %v1362_v42  ;;  %v2450_v44 = vpop.f32.mrb[15].mxu1  ;;  %v2455_v45 = vpop.f32.mrb[25].mxu0  ;;  %v1370_v46 = vadd.f32 %v1368_v39, %v2898_v57 }
 0x7ce   : > { %v1365_v47 = vpop.f32.mrb[26].mxu0 }
 0x7cf   : > { %v2456_v48 = vpop.f32.mrb[27].mxu0  ;;  %v1372_v50 = vsel %vm798_vm6, %v1370_v46, -inf  ;;  %v1371_v52 = vadd.f32 %v1369_v43, %v2898_v57 }
 0x7d0   : > { %1373 = vmax.xlane.f32.xlu0 %v1372_v50 }
 0x7d1   : > { %v1375_v53 = vsel %vm798_vm6, %v1371_v52, -inf }
 0x7d2   : > { %1376 = vmax.xlane.f32.xlu1 %v1375_v53 }
 0x7e3   : > { %1444 = vrot.lane.b32.xlu1 %v2883_v51, %s2676_s14 }
 0x7e7   : > { %1510 = vrot.lane.b32.xlu1 %v2880_v49, %s2677_s23 }
 0x7eb   : > { %1561 = vrot.lane.b32.xlu1 %v2883_v51, %s2677_s23 }
 0x7ef   : > { %1559 = vrot.lane.b32.xlu1 %v2883_v51, %s2678_s26 }
 0x85d   : > { %v1374_v54 = vpop.xlane.xlu0 %1373 }
 0x85e   : > { %v1378_v55 = vsub.f32 %v1370_v46, %v1374_v54 }
 0x85f   : > { %v1377_v56 = vpop.xlane.xlu1 %1376 }
 0x860   : > { %v1380_v58 = vmul.f32 1.442695, %v1378_v55  ;;  %v1379_v59 = vsub.f32 %v1371_v52, %v1377_v56 }
 0x862   : > { %2596 = vpow2.f32 %v1380_v58  ;;  %v1382_v60 = vmul.f32 1.442695, %v1379_v59 }
 0x863   : > { %v1445_v61 = vpop.permute.xlu1 %1444 }
 0x864   : > { %2598 = vpow2.f32 %v1382_v60  ;;  %v1450_v62 = vsel %vm927_vm7, %v1445_v61, 0 }
 0x865   : > { %2464 = vmatpush3.bf16.msra.mxu0 %v1450_v62 }
 0x866   : > { %2475 = vmatprep.subr.bf16.mxu0 %v2667_v22 }
 0x867   : > { %v1511_v10 = vpop.permute.xlu1 %1510 }
 0x868   : > { %v1516_v16 = vsel %vm798_vm6, %v1511_v10, 0 }
 0x86b   : > { %v1562_v15 = vpop.permute.xlu1 %1561 }
 0x86c   : > { %v2597_v63 = vpop.eup %2596  ;;  %v1567_v18 = vsel %vm798_vm6, %v1562_v15, 0 }
 0x86d   : > { %v1384_v0 = vsel %vm798_vm6, %v2597_v63, 0.0 }
 0x86e   : > { %v2599_v1 = vpop.eup %2598  ;;  %1385 = vadd.xlane.f32.xlu0 %v1384_v0 }
 0x86f   : > { %v1387_v2 = vsel %vm798_vm6, %v2599_v1, 0.0  ;;  %v1560_v20 = vpop.permute.xlu1 %1559 }
 0x872   : > { %1388 = vadd.xlane.f32.xlu0 %v1387_v2 }
 0x888   : > { %1396 = vrot.lane.b32.xlu0 %v2880_v49, %s2676_s14 }
 0x88c   : > { %1508 = vrot.lane.b32.xlu0 %v2880_v49, %s2678_s26 }
 0x8fb   : > { %v1386_v3 = vpop.xlane.xlu0 %1385 }
 0x8fc   : > { %2600 = vrcp.f32 %v1386_v3 }
 0x8ff   : > { %v1389_v4 = vpop.xlane.xlu0 %1388 }
 0x900   : > { %2602 = vrcp.f32 %v1389_v4 }
 0x903   : > { %v1397_v5 = vpop.permute.xlu0 %1396 }
 0x904   : > { %v1402_v6 = vsel %vm927_vm7, %v1397_v5, 0 }
 0x905   : > { %2458 = vmatpush3.bf16.msra.mxu1 %v1402_v6  ;;  %v2564_v6 = vld [vmem:[%s3169_s16] sm:$0xff]  }
 0x906   : > { %v2601_v9 = vpop.eup %2600  ;;  %2469 = vmatprep.subr.bf16.mxu1 %v2667_v22 }
 0x907   : > { %v1392_v11 = vmul.f32 %v2601_v9, %v2597_v63  ;;  %v1509_v19 = vpop.permute.xlu0 %1508  ;;  %v2565_v9 = vld [vmem:[%s3169_s16 + $0x8] sm:$0xff]  }
 0x909   : > { %v1394_v12 = vpack.c.bf16 %v1392_v11, %v1392_v11 }
 0x90a   : > { %v2603_v13 = vpop.eup %2602 }
 0x90b   : > { %v1393_v14 = vmul.f32 %v2603_v13, %v2599_v1  ;;  %2460 = vmatmul.mubr.msk.bf16.vlgmr.msra.gmra.mrb[16].mxu1 %vm798_vm6, %v1394_v12 }
 0x90c   : > { %2471 = vmatprep.mubr.msk.bf16.mxu1 %vm2668_vm4, %v2667_v22 }
 0x90d   : > { %v1395_v17 = vpack.c.bf16 %v1393_v14, %v1393_v14 }
 0x90e   : > { %2470 = vmatpush3.bf16.xpose.msra.mxu1 %v1516_v16 }
 0x90f   : > { %2466 = vmatmul.mubr.msk.bf16.vlgmr.msra.gmra.mrb[28].mxu0 %vm798_vm6, %v1395_v17  ;;  %2481 = vmatprep.subr.bf16.mxu1 %v2667_v22 }
 0x910   : > { %2476 = vmatpush3.bf16.xpose.msra.mxu0 %v1567_v18  ;;  %2477 = vmatprep.mubr.msk.bf16.mxu0 %vm2668_vm4, %v2667_v22 }
 0x911   : > { %2487 = vmatprep.subr.bf16.mxu0 %v2667_v22 }
 0x915   : > { %2472 = vmatmul.mubr.msk.bf16.vlgmr.msra.gmra.mrb[20].mxu1 %vm798_vm6, %v1509_v19 }
 0x916   : > { %2483 = vmatprep.mubr.msk.bf16.mxu1 %vm2668_vm4, %v2667_v22 }
 0x917   : > { %2478 = vmatmul.mubr.msk.bf16.vlgmr.msra.gmra.mrb[32].mxu0 %vm798_vm6, %v1560_v20 }
 0x918   : > { %2489 = vmatprep.mubr.msk.bf16.mxu0 %vm2668_vm4, %v2667_v22 }
 0x9de   : > { %v1438_v21 = vpop.f32.mrb[16].mxu1 }
 0x9df   : > { %v2461_v23 = vpop.f32.mrb[17].mxu1 }
 0x9e0   : > { %v1441_v24 = vpop.f32.mrb[18].mxu1 }
 0x9e1   : > { %v2462_v25 = vpop.f32.mrb[19].mxu1  ;;  %v2306_v24 = vld [vmem:[%s3170_s18] ss:$0 sm:$0xff] }
 0x9e2   : > { %v1486_v26 = vpop.f32.mrb[28].mxu0 }
 0x9e3   : > { %v2467_v27 = vpop.f32.mrb[29].mxu0 }
 0x9e4   : > { %v1489_v28 = vpop.f32.mrb[30].mxu0 }
 0x9e5   : > { %v2468_v29 = vpop.f32.mrb[31].mxu0 }
 0x9e8   : > { %v1552_v31 = vpop.f32.mrb[20].mxu1 }
 0x9e9   : > { %v1609_v32 = vmul.f32 0.35355338, %v1552_v31  ;;  %v2473_v33 = vpop.f32.mrb[21].mxu1 }
 0x9ea   : > { %v1555_v35 = vpop.f32.mrb[22].mxu1  ;;  %v1603_v36 = vpop.f32.mrb[32].mxu0 }
 0x9eb   : > { %v1610_v37 = vmul.f32 0.35355338, %v1603_v36  ;;  %v2474_v38 = vpop.f32.mrb[23].mxu1  ;;  %v2479_v39 = vpop.f32.mrb[33].mxu0  ;;  %v1611_v40 = vadd.f32 %v1609_v32, %v2898_v57 }
 0x9ec   : > { %v1606_v41 = vpop.f32.mrb[34].mxu0 }
 0x9ed   : > { %v2480_v42 = vpop.f32.mrb[35].mxu0  ;;  %v1613_v43 = vsel %vm798_vm6, %v1611_v40, -inf  ;;  %v1612_v44 = vadd.f32 %v1610_v37, %v2898_v57 }
 0x9ee   : > { %1614 = vmax.xlane.f32.xlu0 %v1613_v43 }
 0x9ef   : > { %v1616_v45 = vsel %vm798_vm6, %v1612_v44, -inf }
 0x9f0   : > { %1617 = vmax.xlane.f32.xlu1 %v1616_v45  ;;  %v2566_v45 = vld [vmem:[%s2817_s3] sm:$0xff]  }
 0xa01   : > { %1685 = vrot.lane.b32.xlu1 %v2883_v51, %s2679_s25 }
 0xa05   : > { %1253 = vrot.lane.b32.xlu1 %v2966_v30, %s2680_s29 }
 0xa09   : > { %1255 = vrot.lane.b32.xlu1 %v2968_v34, %s2680_s29 }
 0xa0d   : > { %1496 = vrot.lane.b32.xlu1 %v1486_v26, %s2681_s27 }
 0xa7b   : > { %v1615_v46 = vpop.xlane.xlu0 %1614 }
 0xa7c   : > { %v1619_v47 = vsub.f32 %v1611_v40, %v1615_v46  ;;  %v2567_v46 = vld [vmem:[%s2817_s3 + $0x8] sm:$0xff]  }
 0xa7d   : > { %v1618_v57 = vpop.xlane.xlu1 %1617 }
 0xa7e   : > { %v1621_v48 = vmul.f32 1.442695, %v1619_v47  ;;  %v1620_v50 = vsub.f32 %v1612_v44, %v1618_v57 }
 0xa80   : > { %2604 = vpow2.f32 %v1621_v48  ;;  %v1623_v52 = vmul.f32 1.442695, %v1620_v50 }
 0xa81   : > { %v1686_v53 = vpop.permute.xlu1 %1685 }
 0xa82   : > { %2606 = vpow2.f32 %v1623_v52  ;;  %v1691_v51 = vsel %vm927_vm7, %v1686_v53, 0 }
 0xa83   : > { %2488 = vmatpush3.bf16.msra.mxu0 %v1691_v51 }
 0xa84   : > { %2501 = vmatprep.subr.bf16.mxu0 %v2667_v22 }
 0xa85   : > { %v1254_v30 = vpop.permute.xlu1 %1253 }
 0xa86   : > { %1260 = vst.msk [vmem:[#allocation4] sm:$0xff] %vm1259_vm8, %v1254_v30 }
 0xa89   : > { %v1256_v34 = vpop.permute.xlu1 %1255 }
 0xa8a   : > { %v2605_v54 = vpop.eup %2604  ;;  %1261 = vst.msk [vmem:[#allocation4 + $0x8] sm:$0xff] %vm1259_vm8, %v1256_v34  ;;  %v2310_v34 = vld [vmem:[%s633_s13] ss:$0 sm:$0xff] }
 0xa8b   : > { %v1625_v55 = vsel %vm798_vm6, %v2605_v54, 0.0 }
 0xa8c   : > { %v2607_v56 = vpop.eup %2606  ;;  %1626 = vadd.xlane.f32.xlu0 %v1625_v55 }
 0xa8d   : > { %v1497_v58 = vpop.permute.xlu1 %1496  ;;  %v1628_v59 = vsel %vm798_vm6, %v2607_v56, 0.0 }
 0xa8e   : > { %1502 = vst.msk [vmem:[#allocation4 + $0x8] sm:$0xff] %vm1500_vm9, %v1497_v58  ;;  %v2311_v58 = vld [vmem:[%s636_s30] ss:$0 sm:$0xff] }
 0xa90   : > { %1629 = vadd.xlane.f32.xlu0 %v1628_v59 }
 0xaa6   : > { %1637 = vrot.lane.b32.xlu0 %v2880_v49, %s2679_s25 }
 0xaaa   : > { %1494 = vrot.lane.b32.xlu0 %v1438_v21, %s2681_s27 }
 0xb19   : > { %v1627_v60 = vpop.xlane.xlu0 %1626 }
 0xb1a   : > { %2608 = vrcp.f32 %v1627_v60 }
 0xb1d   : > { %v1630_v61 = vpop.xlane.xlu0 %1629 }
 0xb1e   : > { %2610 = vrcp.f32 %v1630_v61 }
 0xb21   : > { %v1638_v62 = vpop.permute.xlu0 %1637 }
 0xb22   : > { %v1643_v63 = vsel %vm927_vm7, %v1638_v62, 0 }
 0xb23   : > { %2482 = vmatpush3.bf16.msra.mxu1 %v1643_v63  ;;  %v2568_v63 = vld [vmem:[%s2827_s24] sm:$0xff]  }
 0xb24   : > { %v2609_v0 = vpop.eup %2608  ;;  %2493 = vmatprep.subr.bf16.mxu1 %v2667_v22 }
 0xb25   : > { %v1633_v1 = vmul.f32 %v2609_v0, %v2605_v54  ;;  %v1495_v2 = vpop.permute.xlu0 %1494  ;;  %v2569_v0 = vld [vmem:[%s2827_s24 + $0x8] sm:$0xff]  }
 0xb26   : > { %1501 = vst.msk [vmem:[#allocation4] sm:$0xff] %vm1500_vm9, %v1495_v2  ;;  %v2571_v2 = vld [vmem:[%s2827_s24 + $0x18] sm:$0xff]  }
 0xb27   : > { %v1635_v3 = vpack.c.bf16 %v1633_v1, %v1633_v1  ;;  %v2570_v1 = vld [vmem:[%s2827_s24 + $0x10] sm:$0xff]  }
 0xb28   : > { %v2611_v49 = vpop.eup %2610 }
 0xb29   : > { %v1634_v4 = vmul.f32 %v2611_v49, %v2607_v56  ;;  %2484 = vmatmul.mubr.msk.bf16.vlgmr.msra.gmra.mrb[24].mxu1 %vm798_vm6, %v1635_v3  ;;  %v2572_v3 = vld [vmem:[%s2827_s24 + $0x20] sm:$0xff]   ;;  %v2573_v49 = vld [vmem:[%s2827_s24 + $0x28] sm:$0xff]  }
 0xb2a   : > { %2497 = vmatprep.mubr.msk.bf16.mxu1 %vm2668_vm4, %v2667_v22  ;;  %2494 = vmatpush3.bf16.msra.mxu1 %v2564_v6  ;;  %v2312_v6 = vld [vmem:[%s644_s5] ss:$0 sm:$0xff] }
 0xb2b   : > { %v1636_v5 = vpack.c.bf16 %v1634_v4, %v1634_v4  ;;  %2495 = vmatprep.subr.bf16.mxu1 %v2667_v22  ;;  %v2574_v4 = vld [vmem:[%s2827_s24 + $0x30] sm:$0xff]  }
 0xb2d   : > { %2490 = vmatmul.mubr.msk.bf16.vlgmr.msra.gmra.mrb[36].mxu0 %vm798_vm6, %v1636_v5  ;;  %v2575_v5 = vld [vmem:[%s2827_s24 + $0x38] sm:$0xff]  }
 0xb2e   : > { %2505 = vmatprep.mubr.msk.bf16.mxu0 %vm2668_vm4, %v2667_v22  ;;  %2496 = vmatpush3.bf16.msra.mxu1 %v2565_v9 }
 0xb2f   : > { %2509 = vmatprep.subr.bf16.mxu1 %v2667_v22  ;;  %2502 = vmatpush3.bf16.msra.mxu0 %v2566_v45 }
 0xb30   : > { %2503 = vmatprep.subr.bf16.mxu0 %v2667_v22 }
 0xb33   : > { %2504 = vmatpush3.bf16.msra.mxu0 %v2567_v46 }
 0xbfc   : > { %v1679_v10 = vpop.f32.mrb[24].mxu1 }
 0xbfd   : > { %1735 = vrot.lane.b32.xlu0 %v1679_v10, %s2682_s17  ;;  %v2485_v11 = vpop.f32.mrb[25].mxu1 }
 0xbfe   : > { %v1682_v12 = vpop.f32.mrb[26].mxu1 }
 0xbff   : > { %v2486_v13 = vpop.f32.mrb[27].mxu1 }
 0xc00   : > { %v1727_v14 = vpop.f32.mrb[36].mxu0 }
 0xc01   : > { %1737 = vrot.lane.b32.xlu1 %v1727_v14, %s2682_s17  ;;  %v2491_v15 = vpop.f32.mrb[37].mxu0 }
 0xc02   : > { %v1730_v16 = vpop.f32.mrb[38].mxu0 }
 0xc03   : > { %v2492_v17 = vpop.f32.mrb[39].mxu0 }
 0xc6f   : > { %v1736_v18 = vpop.permute.xlu0 %1735 }
 0xc70   : > { %1742 = vst.msk [vmem:[#allocation4] sm:$0xff] %vm1741_vm10, %v1736_v18 }
 0xc73   : > { %v1738_v19 = vpop.permute.xlu1 %1737 }
 0xc74   : > { %1743 = vst.msk [vmem:[#allocation4 + $0x8] sm:$0xff] %vm1741_vm10, %v1738_v19 }
 0xc77   : > { %v1744_v20 = vld [vmem:[#allocation4] sm:$0xff] }
 0xc7b   : > { %v1745_v21 = vld [vmem:[#allocation4 + $0x8] sm:$0xff] }
 0xc7c   : > { %v1746_v23 = vpack.c.bf16 %v1745_v21, %v1744_v20 }
 0xc7e   : > { %2498 = vmatmul.mubr.msk.bf16.vlgmr.msra.gmra.mrb[28].mxu1 %vm675_vm3, %v1746_v23 }
 0xc7f   : > { %2525 = vmatprep.mubr.msk.bf16.mxu1 %vm2668_vm4, %v2667_v22  ;;  %2510 = vmatpush3.bf16.msra.mxu1 %v2568_v63 }
 0xc80   : > { %2511 = vmatprep.subr.bf16.mxu1 %v2667_v22 }
 0xc83   : > { %2512 = vmatpush3.bf16.msra.mxu1 %v2569_v0 }
 0xc84   : > { %2513 = vmatprep.subr.bf16.mxu1 %v2667_v22 }
 0xc87   : > { %2514 = vmatpush3.bf16.msra.mxu1 %v2570_v1 }
 0xc88   : > { %2515 = vmatprep.subr.bf16.mxu1 %v2667_v22 }
 0xc8b   : > { %2516 = vmatpush3.bf16.msra.mxu1 %v2571_v2 }
 0xc8c   : > { %2517 = vmatprep.subr.bf16.mxu1 %v2667_v22 }
 0xc8f   : > { %2518 = vmatpush3.bf16.msra.mxu1 %v2572_v3 }
 0xc90   : > { %2519 = vmatprep.subr.bf16.mxu1 %v2667_v22 }
 0xc93   : > { %2520 = vmatpush3.bf16.msra.mxu1 %v2573_v49 }
 0xc94   : > { %2521 = vmatprep.subr.bf16.mxu1 %v2667_v22 }
 0xc97   : > { %2522 = vmatpush3.bf16.msra.mxu1 %v2574_v4 }
 0xc98   : > { %2523 = vmatprep.subr.bf16.mxu1 %v2667_v22 }
 0xc9b   : > { %2524 = vmatpush3.bf16.msra.mxu1 %v2575_v5 }
 0xd51   : > { %v1807_v25 = vpop.f32.mrb[28].mxu1 }
 0xd52   : > { %v1808_v26 = vadd.f32 %v2306_v24, %v1807_v25  ;;  %v2499_v27 = vpop.f32.mrb[29].mxu1 }
 0xd53   : > { %v1810_v28 = vpop.f32.mrb[30].mxu1 }
 0xd54   : > { %v3041_v29 = vadd.f32 %v1808_v26, %v2840_v7  ;;  %v1811_v31 = vadd.f32 %v2306_v24, %v1810_v28  ;;  %v2500_v32 = vpop.f32.mrb[31].mxu1  ;;  %v2318_v28 = vld [vmem:[%s652_s28] ss:$0 sm:$0xff] }
 0xd56   : > { %v3044_v33 = vadd.f32 %v1811_v31, %v2842_v8  ;;  %v1818_v35 = vsel %vm675_vm3, %v3041_v29, 0.0 }
 0xd57   : > { %1819 = vadd.xlane.f32.xlu0 %v1818_v35 }
 0xd58   : > { %v1821_v36 = vsel %vm675_vm3, %v3044_v33, 0.0 }
 0xd59   : > { %1822 = vadd.xlane.f32.xlu1 %v1821_v36 }
 0xde4   : > { %v1820_v37 = vpop.xlane.xlu0 %1819 }
 0xde5   : > { %v1824_v38 = vmul.f32 0.03125, %v1820_v37 }
 0xde6   : > { %v1823_v39 = vpop.xlane.xlu1 %1822 }
 0xde7   : > { %v1826_v7 = vsub.f32 %v3041_v29, %v1824_v38  ;;  %v1825_v40 = vmul.f32 0.03125, %v1823_v39 }
 0xde9   : > { %v1827_v41 = vsub.f32 %v3044_v33, %v1825_v40  ;;  %v1828_v8 = vmul.f32 %v1826_v7, %v1826_v7 }
 0xdeb   : > { %v1830_v42 = vsel %vm675_vm3, %v1828_v8, 0.0  ;;  %v1829_v43 = vmul.f32 %v1827_v41, %v1827_v41 }
 0xdec   : > { %1831 = vadd.xlane.f32.xlu0 %v1830_v42 }
 0xded   : > { %v1833_v44 = vsel %vm675_vm3, %v1829_v43, 0.0 }
 0xdf0   : > { %1834 = vadd.xlane.f32.xlu0 %v1833_v44 }
 0xe79   : > { %v1832_v47 = vpop.xlane.xlu0 %1831 }
 0xe7a   : > { %v1836_v57 = vmul.f32 0.03125, %v1832_v47 }
 0xe7c   : > { %v1838_v48 = vadd.f32 1e-05, %v1836_v57 }
 0xe7d   : > { %v1835_v50 = vpop.xlane.xlu0 %1834 }
 0xe7e   : > { %2612 = vrsqrt.f32 %v1838_v48  ;;  %v1837_v52 = vmul.f32 0.03125, %v1835_v50 }
 0xe80   : > { %v1839_v53 = vadd.f32 1e-05, %v1837_v52 }
 0xe82   : > { %2614 = vrsqrt.f32 %v1839_v53 }
 0xe88   : > { %v2613_v51 = vpop.eup %2612 }
 0xe89   : > { %v1842_v30 = vmul.f32 %v2613_v51, %v1826_v7 }
 0xe8b   : > { %v1850_v55 = vmul.f32 %v2310_v34, %v1842_v30 }
 0xe8c   : > { %v2615_v54 = vpop.eup %2614 }
 0xe8d   : > { %v1843_v56 = vmul.f32 %v2615_v54, %v1827_v41  ;;  %v1858_v60 = vadd.f32 %v2311_v58, %v1850_v55 }
 0xe8f   : > { %v1851_v59 = vmul.f32 %v2310_v34, %v1843_v56 }
 0xe91   : > { %v1859_v61 = vadd.f32 %v2311_v58, %v1851_v59 }
 0xe93   : > { %v1860_v62 = vpack.c.bf16 %v1859_v61, %v1858_v60 }
 0xe95   : > { %2506 = vmatmul.mubr.msk.bf16.vlgmr.msra.gmra.mrb[40].mxu0 %vm675_vm3, %v1860_v62 }
 0xf68   : > { %v1921_v9 = vpop.f32.mrb[40].mxu0 }
 0xf69   : > { %v1922_v10 = vadd.f32 %v2312_v6, %v1921_v9  ;;  %v2507_v11 = vpop.f32.mrb[41].mxu0 }
 0xf6a   : > { %v1924_v12 = vpop.f32.mrb[42].mxu0 }
 0xf6b   : > { %v2316_v13 = vmul.f32 -1.702, %v1922_v10  ;;  %v1925_v14 = vadd.f32 %v2312_v6, %v1924_v12  ;;  %v2508_v15 = vpop.f32.mrb[43].mxu0 }
 0xf6d   : > { %v1932_v16 = vmul.f32 1.442695, %v2316_v13  ;;  %v2317_v17 = vmul.f32 -1.702, %v1925_v14 }
 0xf6f   : > { %2616 = vpow2.f32 %v1932_v16  ;;  %v1934_v18 = vmul.f32 1.442695, %v2317_v17 }
 0xf71   : > { %2618 = vpow2.f32 %v1934_v18 }
 0xf79   : > { %v2617_v22 = vpop.eup %2616 }
 0xf7a   : > { %v1936_v19 = vadd.f32 1.0, %v2617_v22 }
 0xf7b   : > { %v2619_v20 = vpop.eup %2618 }
 0xf7c   : > { %2620 = vrcp.f32 %v1936_v19  ;;  %v1937_v21 = vadd.f32 1.0, %v2619_v20 }
 0xf7e   : > { %2622 = vrcp.f32 %v1937_v21 }
 0xf86   : > { %v2621_v23 = vpop.eup %2620 }
 0xf87   : > { %v1942_v25 = vmul.f32 %v2621_v23, %v1922_v10 }
 0xf88   : > { %v2623_v24 = vpop.eup %2622 }
 0xf89   : > { %v1943_v26 = vmul.f32 %v2623_v24, %v1925_v14 }
 0xf8b   : > { %v1944_v27 = vpack.c.bf16 %v1943_v26, %v1942_v25 }
 0xf8d   : > { %2526 = vmatmul.mubr.bf16.vlgmr.msra.gmra.mrb[32].mxu1 %v1944_v27 }
0x105f   : > { %2062 = sbr.rel (%p2327_p5) target bundleno = 4200 (0x1068), region = 88 }
0x1060   : > { %v2050_v31 = vpop.f32.mrb[32].mxu1 }
0x1061   : > { %v2051_v32 = vadd.f32 %v2318_v28, %v2050_v31  ;;  %v2527_v35 = vpop.f32.mrb[33].mxu1 }
0x1062   : > { %v2053_v36 = vpop.f32.mrb[34].mxu1 }
0x1063   : > { %v2057_v37 = vadd.f32 %v2051_v32, %v3041_v29  ;;  %v2054_v38 = vadd.f32 %v2318_v28, %v2053_v36  ;;  %v2528_v39 = vpop.f32.mrb[35].mxu1 }
0x1065   : > { %v2058_v7 = vadd.f32 %v2054_v38, %v3044_v33  ;;  %2063 = vst.msk [vmem:[#allocation2] sm:$0xff] (!%p2327_p5), %vm675_vm3, %v2057_v37 }
0x1067   : > { %2064 = vst.msk [vmem:[#allocation2 + $0x8] sm:$0xff] %vm675_vm3, %v2058_v7 }
0x1068 PF: > { %p2328_p6 = scmp.ne.s32.totalorder %s2771_s19, 1 }
0x1069   : > { %v2071_v40 = vsel (!%p2328_p6), %vm675_vm3, %v2057_v37, 0.0  ;;  %v2074_v29 = vsel (!%p2328_p6), %vm675_vm3, %v2058_v7, 0.0  ;;  %s3171_s26 = sld [smem:[#allocation13_spill]] (!%p2328_p6)  ;;  %s3172_s16 = sld [smem:[#allocation14_spill]] (!%p2328_p6) }
0x106a   : > { %2068 = sbr.rel (%p2328_p6) target bundleno = 4519 (0x11a7), region = 92  ;;  %2072 = vadd.xlane.f32.xlu0 (!%p2328_p6), %v2071_v40 }
0x106e   : > { %2075 = vadd.xlane.f32.xlu0 (!%p2328_p6), %v2074_v29 }
0x106f   : > { %v2329_v54 = vld [vmem:[%s3171_s26] ss:$0 sm:$0xff] (!%p2328_p6) }
0x1070   : > { %v2330_v56 = vld [vmem:[%s3172_s16] ss:$0 sm:$0xff] (!%p2328_p6) }
0x10f7   : > { %v2073_v41 = vpop.xlane.xlu0 %2072 }
0x10f8   : > { %v2077_v8 = vmul.f32 0.03125, %v2073_v41 }
0x10fa   : > { %v2079_v33 = vsub.f32 %v2057_v37, %v2077_v8 }
0x10fb   : > { %v2076_v42 = vpop.xlane.xlu0 %2075 }
0x10fc   : > { %v2078_v43 = vmul.f32 0.03125, %v2076_v42  ;;  %v2081_v44 = vmul.f32 %v2079_v33, %v2079_v33 }
0x10fe   : > { %v2080_v45 = vsub.f32 %v2058_v7, %v2078_v43  ;;  %v2083_v46 = vsel %vm675_vm3, %v2081_v44, 0.0 }
0x10ff   : > { %2084 = vadd.xlane.f32.xlu1 %v2083_v46 }
0x1100   : > { %v2082_v47 = vmul.f32 %v2080_v45, %v2080_v45 }
0x1102   : > { %v2086_v57 = vsel %vm675_vm3, %v2082_v47, 0.0 }
0x1103   : > { %2087 = vadd.xlane.f32.xlu1 %v2086_v57 }
0x118c   : > { %v2085_v48 = vpop.xlane.xlu1 %2084 }
0x118d   : > { %v2089_v50 = vmul.f32 0.03125, %v2085_v48 }
0x118f   : > { %v2091_v52 = vadd.f32 1e-05, %v2089_v50 }
0x1190   : > { %v2088_v53 = vpop.xlane.xlu1 %2087 }
0x1191   : > { %2624 = vrsqrt.f32 %v2091_v52  ;;  %v2090_v51 = vmul.f32 0.03125, %v2088_v53 }
0x1193   : > { %v2092_v30 = vadd.f32 1e-05, %v2090_v51 }
0x1195   : > { %2626 = vrsqrt.f32 %v2092_v30 }
0x119b   : > { %v2625_v34 = vpop.eup %2624 }
0x119c   : > { %v2095_v55 = vmul.f32 %v2625_v34, %v2079_v33 }
0x119e   : > { %v2103_v58 = vmul.f32 %v2329_v54, %v2095_v55 }
0x119f   : > { %v2627_v59 = vpop.eup %2626 }
0x11a0   : > { %v2111_v60 = vadd.f32 %v2330_v56, %v2103_v58  ;;  %v2096_v61 = vmul.f32 %v2627_v59, %v2080_v45 }
0x11a2   : > { %2113 = vst.msk [vmem:[#allocation6] sm:$0xff] %vm675_vm3, %v2111_v60  ;;  %v2104_v62 = vmul.f32 %v2329_v54, %v2096_v61 }
0x11a4   : > { %v2112_v63 = vadd.f32 %v2330_v56, %v2104_v62 }
0x11a6   : > { %2114 = vst.msk [vmem:[#allocation6 + $0x8] sm:$0xff] %vm675_vm3, %v2112_v63 }
0x11a7 PF: > { %p2533_p7 = scmp.eq.s32.totalorder %s2771_s19, 1  ;;  %s2683_s17 = smov [#allocation6]  }
0x11a8   : > { %s2121_s15 = sshll.u32 %s2683_s17, 4  ;;  %s2122_s15 = int_to_ptr.vmem [resolvable:$true] %s2121_s15 }
0x11a9   : > { %s2628_s21 = scalar_lea.vmem %s2122_s15, 256  ;;  %p2635_p11 = scmp.lt.s32.totalorder %s2122_s15, %s2122_s15 }
0x11aa   : > { %p2629_p8 = scmp.ne.s32.totalorder %s2122_s15, %s2628_s21  ;;  %p2636_p12 = scmp.lt.s32.totalorder %s2628_s21, %s2628_s21 }
0x11ac   : > { %p2630_p9 = pnand %p2629_p8, %p2533_p7  ;;  %p2637_p13 = por %p2636_p12, %p2635_p11 }
0x11ae   : > { %p2631_p10 = pneg %p2630_p9 }
0x11b0   : > { %p2638_p0 = pnand %p2637_p13, %p2631_p10 }
0x11b2   : > { %2641 = shalt.err (!%p2638_p0)
}
0x11b3   : > { %s3173_s14 = sld [smem:[#allocation15_spill]] }
0x11b9   : > { %s2642_s3 = scalar_lea.hbm %s3173_s14, 256 }
0x11ba   : > { %p2643_p1 = scmp.ne.s32.totalorder %s3173_s14, %s2642_s3  ;;  %p2648_p4 = scmp.lt.u32.totalorder %s2642_s3, %s3173_s14 }
0x11bc   : > { %p2644_p2 = pnand %p2643_p1, %p2533_p7 }
0x11be   : > { %p2645_p3 = pneg %p2644_p2 }
0x11c0   : > { %p2650_p5 = pnand %p2648_p4, %p2645_p3 }
0x11c2   : > { %2653 = shalt.err (!%p2650_p5)
}
0x11c3   : > { %s2684_s24 = smov 128  }
0x11c4   : > { %2530 = dma.vmem_to_hbm [thread:$0]  (%p2533_p7), %s2122_s15, 256, %s3173_s14, [#allocation7], %s2684_s24, %s2684_s24, %s2680_s29  }
0x11c5   : > { %2659 = dma.done.wait (%p2533_p7), [#allocation7], 256  }
0x11c6   : > { %2661 = vsyncadd (%p2533_p7), [#allocation7], 4294967040 }
0x11c7 PF: > { %s3174_s26 = sld [smem:[#allocation9_spill]] }
0x11cd   : > { %s26_s18 = sadd.s32 1, %s3174_s26  }
0x11ce   : > { %p23_p6 = scmp.ge.s32.totalorder %s26_s18, 4  }
0x11d0   :  { %25 = sbr.rel (!%p23_p6) target bundleno = 7 (0x7), region = 152 }
0x11d7   :  { %2137 = vsyncpa [#allocation7], 1 }
0x11d8   :  { %2139 = vsyncpa [#allocation7 + $0x1], 1 }

</bundles_post_ra>
